<compile_context>
chip_gen: v7x
topology: tpu7x:2x2x1
jax: 0.10.0
libtpu: 0.0.40
codegen_flags: <defaults>
</compile_context>

<pallas_src>
import jax
import jax.numpy as jnp
from jax import lax
from jax.experimental import pallas as pl
from jax.experimental.pallas import tpu as pltpu

# Full-f32 matmul precision for both the pure-JAX reference and the dots
# traced inside the Pallas kernels (precision is resolved at trace time).
jax.config.update("jax_default_matmul_precision", "highest")


# ----------------------------- model config ---------------------------------
HIDDEN_SIZE = 64
NUM_HEADS = 4
NUM_KV_HEADS = 2
GROUP = NUM_HEADS // NUM_KV_HEADS             # 2
HEAD_DIM = HIDDEN_SIZE // NUM_HEADS           # 16
HALF_DIM = HEAD_DIM // 2                      # 8
Q_SIZE = NUM_HEADS * HEAD_DIM                 # 64
KV_SIZE = NUM_KV_HEADS * HEAD_DIM             # 32
QKV_SIZE = Q_SIZE + 2 * KV_SIZE               # 128  (q|k|v lane width)
ROT_SIZE = Q_SIZE + KV_SIZE                   # 96   (rot(q)|rot(k))
W_AUG_COLS = 2 * QKV_SIZE                     # 256  (rot section zero-padded)
SCALE = HEAD_DIM ** (-0.5)
ROPE_THETA = 10000.0
SEQ_LEN = 8
NEG_INF = -1e30


# ------------------------- kernel 1: qkv_proj + RoPE -------------------------
def qkv_rope_kernel(x_ref, w_ref, b_ref, cos_ref, sin_ref, o_ref):
    # w packs [Wq^T*scale | Wk^T | Wv^T | Wq^T*scale@Rq | Wk^T@Rk | 0] so the
    # whole projection + rotate-half is one lane-dense matmul; RoPE reduces to
    # two elementwise multiplies (no reshapes / transposes / concats here).
    acts = jnp.dot(x_ref[...], w_ref[...], preferred_element_type=jnp.float32)
    acts = acts + b_ref[...]
    o_ref[...] = (acts[:, :QKV_SIZE] * cos_ref[...] +
                  acts[:, QKV_SIZE:] * sin_ref[...]).astype(o_ref.dtype)


# ------------------ kernel 2: causal GQA flash attn + o_proj -----------------
def attn_oproj_kernel(q_ref, kv_ref, wo_ref, o_ref, m_ref, l_ref, acc_ref):
    qi = pl.program_id(0)
    ki = pl.program_id(1)
    tq = q_ref.shape[0]
    tk = kv_ref.shape[0]
    q0 = qi * tq
    k0 = ki * tk

    @pl.when(ki == 0)
    def _init():
        m_ref[...] = jnp.full(m_ref.shape, -jnp.inf, m_ref.dtype)
        l_ref[...] = jnp.zeros(l_ref.shape, l_ref.dtype)
        acc_ref[...] = jnp.zeros(acc_ref.shape, acc_ref.dtype)

    # kv tiles strictly above the causal diagonal contribute nothing: skip.
    @pl.when(k0 <= q0 + tq - 1)
    def _update():
        qkv_q = q_ref[...]        # [tq, 128]: [q_roped*scale | k | v] (q rows)
        qkv_k = kv_ref[...]       # [tk, 128]                          (kv rows)

        # Head-major views (one lane-slice per head), then a single batched
        # contraction over all heads; kv heads are shared across GROUP q heads.
        qh = jnp.stack(
            [qkv_q[:, h * HEAD_DIM:(h + 1) * HEAD_DIM]
             for h in range(NUM_HEADS)], axis=0)                  # [H, tq, D]
        kh = jnp.stack(
            [qkv_k[:, Q_SIZE + (h // GROUP) * HEAD_DIM:
                      Q_SIZE + (h // GROUP + 1) * HEAD_DIM]
             for h in range(NUM_HEADS)], axis=0)                  # [H, tk, D]
        vh = jnp.stack(
            [qkv_k[:, Q_SIZE + KV_SIZE + (h // GROUP) * HEAD_DIM:
                      Q_SIZE + KV_SIZE + (h // GROUP + 1) * HEAD_DIM]
             for h in range(NUM_HEADS)], axis=0)                  # [H, tk, D]

        # Causal mask for this (q tile, kv tile) pair, computed once and
        # shared by all heads.
        rows = q0 + lax.broadcasted_iota(jnp.int32, (tq, tk), 0)
        cols = k0 + lax.broadcasted_iota(jnp.int32, (tq, tk), 1)
        causal = (cols <= rows)[None]

        s = jnp.einsum('hqd,hkd->hqk', qh, kh,
                       preferred_element_type=jnp.float32)        # scale folded in q
        s = jnp.where(causal, s, NEG_INF)

        m_prev = m_ref[...]
        m_new = jnp.maximum(m_prev, s.max(axis=-1, keepdims=True))
        alpha = jnp.exp(m_prev - m_new)
        p = jnp.exp(s - m_new)
        l_ref[...] = alpha * l_ref[...] + p.sum(axis=-1, keepdims=True)
        acc_ref[...] = alpha * acc_ref[...] + jnp.einsum(
            'hqk,hkd->hqd', p, vh, preferred_element_type=jnp.float32)
        m_ref[...] = m_new

    @pl.when(ki == pl.num_programs(1) - 1)
    def _finalize():
        # Exact softmax normalization (denominator is a tiny [H,tq,1] tensor,
        # so the division cost is negligible and keeps the check tight).
        attn = acc_ref[...] / l_ref[...]                              # [H,tq,D]
        # o_proj fused: wo is pre-reshaped to [H, D, HIDDEN]; batched matmul
        # then reduce over heads (no transpose/reshape of attn, no concat).
        out = jnp.einsum('hqd,hde->hqe', attn, wo_ref[...],
                         preferred_element_type=jnp.float32).sum(axis=0)
        o_ref[...] = out.astype(o_ref.dtype)


# --------------------------------- wrapper -----------------------------------
def _pick_block(n, cap):
    b = min(n, cap)
    while n % b:
        b -= 8
    return b


@jax.jit
def qwen2_attention(positions, hidden_states, wqkv, bqkv, wo):
    T, H = hidden_states.shape
    assert H == HIDDEN_SIZE and T % 8 == 0
    dtype = hidden_states.dtype
    f32 = jnp.float32

    # ---- one-time weight plumbing (paid outside the kernels) ----------------
    # rotate-half as a block-diagonal +-1 matrix so the RoPE rotation folds
    # into the qkv weights; the attention scale folds into the q slice.
    r_head = jnp.zeros((HEAD_DIM, HEAD_DIM), f32)
    idx = jnp.arange(HALF_DIM)
    r_head = r_head.at[idx, idx + HALF_DIM].set(1.0)
    r_head = r_head.at[idx + HALF_DIM, idx].set(-1.0)
    rq = jnp.kron(jnp.eye(NUM_HEADS, dtype=f32), r_head)        # [64, 64]
    rk = jnp.kron(jnp.eye(NUM_KV_HEADS, dtype=f32), r_head)     # [32, 32]

    wqkv_t = wqkv.T.astype(f32)                                 # pre-transposed
    wq = wqkv_t[:, :Q_SIZE] * SCALE
    wk = wqkv_t[:, Q_SIZE:Q_SIZE + KV_SIZE]
    wv = wqkv_t[:, Q_SIZE + KV_SIZE:]
    bq = bqkv[:Q_SIZE].astype(f32) * SCALE
    bk = bqkv[Q_SIZE:Q_SIZE + KV_SIZE].astype(f32)
    bv = bqkv[Q_SIZE + KV_SIZE:].astype(f32)

    zpad_w = jnp.zeros((HIDDEN_SIZE, W_AUG_COLS - QKV_SIZE - ROT_SIZE), f32)
    zpad_b = jnp.zeros((W_AUG_COLS - QKV_SIZE - ROT_SIZE,), f32)
    w_aug = jnp.concatenate([wq, wk, wv, wq @ rq, wk @ rk, zpad_w], axis=1)
    b_aug = jnp.concatenate([bq, bk, bv, bq @ rq, bk @ rk, zpad_b])[None, :]
    wo3 = wo.T.astype(f32).reshape(NUM_HEADS, HEAD_DIM, HIDDEN_SIZE)

    # ---- RoPE tables tiled to the flat lane layout ([T,128], lane-dense) ----
    inv_freq = 1.0 / (ROPE_THETA ** (
        jnp.arange(0, HEAD_DIM, 2, dtype=f32) / HEAD_DIM))
    freqs = positions.astype(f32)[:, None] * inv_freq[None, :]   # [T, 8]
    cos_h, sin_h = jnp.cos(freqs), jnp.sin(freqs)
    cos_tab = jnp.concatenate(
        [jnp.tile(cos_h, (1, 2 * NUM_HEADS)),
         jnp.tile(cos_h, (1, 2 * NUM_KV_HEADS)),
         jnp.ones((T, KV_SIZE), f32)], axis=1)                   # [T, 128]
    sin_tab = jnp.concatenate(
        [jnp.tile(sin_h, (1, 2 * NUM_HEADS)),
         jnp.tile(sin_h, (1, 2 * NUM_KV_HEADS)),
         jnp.zeros((T, KV_SIZE), f32)], axis=1)                  # [T, 128]

    # ---- kernel 1: qkv_proj + RoPE, tiled over tokens (parallel axis) -------
    tb = _pick_block(T, 256)
    qkvr = pl.pallas_call(
        qkv_rope_kernel,
        out_shape=jax.ShapeDtypeStruct((T, QKV_SIZE), dtype),
        grid=(T // tb,),
        in_specs=[
            pl.BlockSpec((tb, HIDDEN_SIZE), lambda i: (i, 0)),
            pl.BlockSpec((HIDDEN_SIZE, W_AUG_COLS), lambda i: (0, 0)),
            pl.BlockSpec((1, W_AUG_COLS), lambda i: (0, 0)),
            pl.BlockSpec((tb, QKV_SIZE), lambda i: (i, 0)),
            pl.BlockSpec((tb, QKV_SIZE), lambda i: (i, 0)),
        ],
        out_specs=pl.BlockSpec((tb, QKV_SIZE), lambda i: (i, 0)),
        compiler_params=pltpu.CompilerParams(
            dimension_semantics=("parallel",)),
    )(hidden_states, w_aug, b_aug, cos_tab, sin_tab)

    # ---- kernel 2: flash attention + o_proj ---------------------------------
    tq = _pick_block(T, 128)
    tk = tq                      # equal tiles -> exact above-diagonal skip
    out = pl.pallas_call(
        attn_oproj_kernel,
        out_shape=jax.ShapeDtypeStruct((T, HIDDEN_SIZE), dtype),
        grid=(T // tq, T // tk),
        in_specs=[
            pl.BlockSpec((tq, QKV_SIZE), lambda qi, ki: (qi, 0)),   # q rows
            pl.BlockSpec((tk, QKV_SIZE), lambda qi, ki: (ki, 0)),   # kv rows
            pl.BlockSpec((NUM_HEADS, HEAD_DIM, HIDDEN_SIZE),
                         lambda qi, ki: (0, 0, 0)),
        ],
        out_specs=pl.BlockSpec((tq, HIDDEN_SIZE), lambda qi, ki: (qi, 0)),
        scratch_shapes=[
            pltpu.VMEM((NUM_HEADS, tq, 1), jnp.float32),            # m
            pltpu.VMEM((NUM_HEADS, tq, 1), jnp.float32),            # l
            pltpu.VMEM((NUM_HEADS, tq, HEAD_DIM), jnp.float32),     # acc
        ],
        compiler_params=pltpu.CompilerParams(
            dimension_semantics=("parallel", "arbitrary")),
    )(qkvr, qkvr, wo3)
    return out


# ----------------------------- pure-JAX reference ----------------------------
def qwen2_attention_ref(positions, x, wqkv, bqkv, wo):
    T = x.shape[0]
    qkv = x @ wqkv.T + bqkv
    q, k, v = (qkv[:, :Q_SIZE], qkv[:, Q_SIZE:Q_SIZE + KV_SIZE],
               qkv[:, Q_SIZE + KV_SIZE:])
    inv_freq = 1.0 / (ROPE_THETA ** (
        jnp.arange(0, HEAD_DIM, 2, dtype=jnp.float32) / HEAD_DIM))
    freqs = positions.astype(jnp.float32)[:, None] * inv_freq[None, :]
    cos, sin = jnp.cos(freqs), jnp.sin(freqs)

    def rope(t, nh):
        t = t.reshape(T, nh, HEAD_DIM)
        t1, t2 = t[..., :HALF_DIM], t[..., HALF_DIM:]
        c, s = cos[:, None, :], sin[:, None, :]
        return jnp.concatenate([t1 * c - t2 * s, t2 * c + t1 * s], axis=-1)

    qh, kh = rope(q, NUM_HEADS), rope(k, NUM_KV_HEADS)
    vh = v.reshape(T, NUM_KV_HEADS, HEAD_DIM)
    mask = jnp.tril(jnp.ones((T, T), bool))
    outs = []
    for h in range(NUM_HEADS):
        kv_h = h // GROUP
        s_ = (qh[:, h] @ kh[:, kv_h].T) * SCALE
        s_ = jnp.where(mask, s_, NEG_INF)
        p = jax.nn.softmax(s_, axis=-1)
        outs.append(p @ vh[:, kv_h])
    return jnp.concatenate(outs, axis=-1) @ wo.T


# ---------------------------------- main --------------------------------------
if __name__ == "__main__":
    key = jax.random.PRNGKey(0)
    k1, k2, k3, k4 = jax.random.split(key, 4)

    positions = jnp.arange(SEQ_LEN, dtype=jnp.int32)
    hidden_states = jax.random.normal(k1, (SEQ_LEN, HIDDEN_SIZE),
                                      dtype=jnp.float32)
    # qkv_proj: weight [q_size + 2*kv_size, hidden], bias [q_size + 2*kv_size]
    wqkv = (jax.random.normal(k2, (QKV_SIZE, HIDDEN_SIZE), jnp.float32)
            * (HIDDEN_SIZE ** -0.5))
    bqkv = jax.random.normal(k3, (QKV_SIZE,), jnp.float32) * 0.02
    # o_proj: weight [hidden, num_heads * head_dim], no bias
    wo = (jax.random.normal(k4, (HIDDEN_SIZE, Q_SIZE), jnp.float32)
          * (Q_SIZE ** -0.5))

    out = qwen2_attention(positions, hidden_states, wqkv, bqkv, wo)
    out = jax.block_until_ready(out)

    ref = qwen2_attention_ref(positions, hidden_states, wqkv, bqkv, wo)
    assert out.shape == (SEQ_LEN, HIDDEN_SIZE)
    # Tolerance covers residual MXU rounding differences between the fused
    # kernel (scale/rotation folded into weights) and the reference layout;
    # any genuine logic bug (mask / head mapping / RoPE) produces O(0.1-1)
    # errors and would still trip this check.
    assert jnp.allclose(out, ref, atol=1e-2, rtol=1e-2), "mismatch vs reference"

    print("KERNEL_OK")
</pallas_src>

<mosaic_0001>
module attributes {stable_mosaic.version = 11 : i64} {
  func.func @qkv_rope_kernel(%arg0: i32, %arg1: memref<8x64xf32, #tpu.memory_space<vmem>>, %arg2: memref<64x256xf32, #tpu.memory_space<vmem>>, %arg3: memref<1x256xf32, #tpu.memory_space<vmem>>, %arg4: memref<8x128xf32, #tpu.memory_space<vmem>>, %arg5: memref<8x128xf32, #tpu.memory_space<vmem>>, %arg6: memref<8x128xf32, #tpu.memory_space<vmem>>) attributes {dimension_semantics = [#tpu.dimension_semantics<parallel>], iteration_bounds = array<i64: 1>, scalar_prefetch = 0 : i64, scratch_operands = 0 : i64, tpu.core_type = #tpu.core_type<tc>, window_params = [{transform_indices = @transform_0, window_bounds = array<i64: 8, 64>}, {pipeline_mode = #tpu.pipeline_mode<synchronous>, transform_indices = @transform_1, window_bounds = array<i64: 64, 256>}, {pipeline_mode = #tpu.pipeline_mode<synchronous>, transform_indices = @transform_2, window_bounds = array<i64: 1, 256>}, {transform_indices = @transform_3, window_bounds = array<i64: 8, 128>}, {transform_indices = @transform_4, window_bounds = array<i64: 8, 128>}, {transform_indices = @transform_5, window_bounds = array<i64: 8, 128>}]} {
    %c0 = arith.constant 0 : index
    %c0_0 = arith.constant 0 : index
    %0 = vector.load %arg1[%c0, %c0_0] : memref<8x64xf32, #tpu.memory_space<vmem>>, vector<8x64xf32>
    %c0_1 = arith.constant 0 : index
    %c0_2 = arith.constant 0 : index
    %1 = vector.load %arg2[%c0_1, %c0_2] : memref<64x256xf32, #tpu.memory_space<vmem>>, vector<64x256xf32>
    %cst = arith.constant dense<0.000000e+00> : vector<8x256xf32>
    %2 = tpu.matmul %0, %1, %cst {dimension_numbers = #tpu.dot_dimension_numbers<[1], [0], [0], [1], [0, 0, 1, 1], [], []>, precision = #tpu.contract_precision<fp32>} : vector<8x64xf32>, vector<64x256xf32>, vector<8x256xf32> -> vector<8x256xf32>
    %c0_3 = arith.constant 0 : index
    %c0_4 = arith.constant 0 : index
    %3 = vector.load %arg3[%c0_3, %c0_4] : memref<1x256xf32, #tpu.memory_space<vmem>>, vector<1x256xf32>
    %4 = vector.broadcast %3 : vector<1x256xf32> to vector<8x256xf32>
    %5 = arith.addf %2, %4 : vector<8x256xf32>
    %6 = vector.extract_strided_slice %5 {offsets = [0, 0], sizes = [8, 128], strides = [1, 1]} : vector<8x256xf32> to vector<8x128xf32>
    %c0_5 = arith.constant 0 : index
    %c0_6 = arith.constant 0 : index
    %7 = vector.load %arg4[%c0_5, %c0_6] : memref<8x128xf32, #tpu.memory_space<vmem>>, vector<8x128xf32>
    %8 = arith.mulf %6, %7 : vector<8x128xf32>
    %9 = vector.extract_strided_slice %5 {offsets = [0, 128], sizes = [8, 128], strides = [1, 1]} : vector<8x256xf32> to vector<8x128xf32>
    %c0_7 = arith.constant 0 : index
    %c0_8 = arith.constant 0 : index
    %10 = vector.load %arg5[%c0_7, %c0_8] : memref<8x128xf32, #tpu.memory_space<vmem>>, vector<8x128xf32>
    %11 = arith.mulf %9, %10 : vector<8x128xf32>
    %12 = arith.addf %8, %11 : vector<8x128xf32>
    %c0_9 = arith.constant 0 : index
    %c0_10 = arith.constant 0 : index
    %13 = vector.load %arg6[%c0_9, %c0_10] : memref<8x128xf32, #tpu.memory_space<vmem>>, vector<8x128xf32>
    tpu.vector_store %arg6[%c0_9, %c0_10], %12 {strides = array<i32>} : memref<8x128xf32, #tpu.memory_space<vmem>>, vector<8x128xf32>,
    return
  }
  func.func @transform_0(%arg0: i32) -> (i32, i32) {
    %c0_i32 = arith.constant 0 : i32
    %c0_i32_0 = arith.constant 0 : i32
    return %arg0, %c0_i32 : i32, i32
  }
  func.func @transform_1(%arg0: i32) -> (i32, i32) {
    %c0_i32 = arith.constant 0 : i32
    %c0_i32_0 = arith.constant 0 : i32
    %c0_i32_1 = arith.constant 0 : i32
    return %c0_i32, %c0_i32_0 : i32, i32
  }
  func.func @transform_2(%arg0: i32) -> (i32, i32) {
    %c0_i32 = arith.constant 0 : i32
    %c0_i32_0 = arith.constant 0 : i32
    %c0_i32_1 = arith.constant 0 : i32
    return %c0_i32, %c0_i32_0 : i32, i32
  }
  func.func @transform_3(%arg0: i32) -> (i32, i32) {
    %c0_i32 = arith.constant 0 : i32
    %c0_i32_0 = arith.constant 0 : i32
    return %arg0, %c0_i32 : i32, i32
  }
  func.func @transform_4(%arg0: i32) -> (i32, i32) {
    %c0_i32 = arith.constant 0 : i32
    %c0_i32_0 = arith.constant 0 : i32
    return %arg0, %c0_i32 : i32, i32
  }
  func.func @transform_5(%arg0: i32) -> (i32, i32) {
    %c0_i32 = arith.constant 0 : i32
    %c0_i32_0 = arith.constant 0 : i32
    return %arg0, %c0_i32 : i32, i32
  }
}

module attributes {stable_mosaic.version = 11 : i64} {
  func.func @attn_oproj_kernel(%arg0: i32, %arg1: i32, %arg2: memref<8x128xf32, #tpu.memory_space<vmem>>, %arg3: memref<8x128xf32, #tpu.memory_space<vmem>>, %arg4: memref<4x16x64xf32, #tpu.memory_space<vmem>>, %arg5: memref<8x64xf32, #tpu.memory_space<vmem>>, %arg6: memref<4x8x1xf32, #tpu.memory_space<vmem>>, %arg7: memref<4x8x1xf32, #tpu.memory_space<vmem>>, %arg8: memref<4x8x16xf32, #tpu.memory_space<vmem>>) attributes {dimension_semantics = [#tpu.dimension_semantics<parallel>, #tpu.dimension_semantics<arbitrary>], iteration_bounds = array<i64: 1, 1>, scalar_prefetch = 0 : i64, scratch_operands = 3 : i64, tpu.core_type = #tpu.core_type<tc>, window_params = [{transform_indices = @transform_0, window_bounds = array<i64: 8, 128>}, {transform_indices = @transform_1, window_bounds = array<i64: 8, 128>}, {pipeline_mode = #tpu.pipeline_mode<synchronous>, transform_indices = @transform_2, window_bounds = array<i64: 4, 16, 64>}, {transform_indices = @transform_3, window_bounds = array<i64: 8, 64>}]} {
    %c8_i32 = arith.constant 8 : i32
    %0 = arith.muli %arg0, %c8_i32 : i32
    %c8_i32_0 = arith.constant 8 : i32
    %1 = arith.muli %arg1, %c8_i32_0 : i32
    %c0_i32 = arith.constant 0 : i32
    %2 = arith.cmpi eq, %arg1, %c0_i32 : i32
    %3 = arith.extui %2 : i1 to i32
    %c0_i32_1 = arith.constant 0 : i32
    %4 = arith.cmpi ne, %3, %c0_i32_1 : i32
    scf.if %4 {
      %cst = arith.constant 0xFF800000 : f32
      %13 = vector.broadcast %cst : f32 to vector<4x8x1xf32>
      %c0 = arith.constant 0 : index
      %c0_6 = arith.constant 0 : index
      %c0_7 = arith.constant 0 : index
      %14 = vector.load %arg6[%c0, %c0_6, %c0_7] : memref<4x8x1xf32, #tpu.memory_space<vmem>>, vector<4x8x1xf32>
      tpu.vector_store %arg6[%c0, %c0_6, %c0_7], %13 {strides = array<i32>} : memref<4x8x1xf32, #tpu.memory_space<vmem>>, vector<4x8x1xf32>,
      %cst_8 = arith.constant 0.000000e+00 : f32
      %15 = vector.broadcast %cst_8 : f32 to vector<4x8x1xf32>
      %c0_9 = arith.constant 0 : index
      %c0_10 = arith.constant 0 : index
      %c0_11 = arith.constant 0 : index
      %16 = vector.load %arg7[%c0_9, %c0_10, %c0_11] : memref<4x8x1xf32, #tpu.memory_space<vmem>>, vector<4x8x1xf32>
      tpu.vector_store %arg7[%c0_9, %c0_10, %c0_11], %15 {strides = array<i32>} : memref<4x8x1xf32, #tpu.memory_space<vmem>>, vector<4x8x1xf32>,
      %cst_12 = arith.constant 0.000000e+00 : f32
      %17 = vector.broadcast %cst_12 : f32 to vector<4x8x16xf32>
      %c0_13 = arith.constant 0 : index
      %c0_14 = arith.constant 0 : index
      %c0_15 = arith.constant 0 : index
      %18 = vector.load %arg8[%c0_13, %c0_14, %c0_15] : memref<4x8x16xf32, #tpu.memory_space<vmem>>, vector<4x8x16xf32>
      tpu.vector_store %arg8[%c0_13, %c0_14, %c0_15], %17 {strides = array<i32>} : memref<4x8x16xf32, #tpu.memory_space<vmem>>, vector<4x8x16xf32>,
    } else {
    }
    %c8_i32_2 = arith.constant 8 : i32
    %5 = arith.addi %0, %c8_i32_2 : i32
    %c1_i32 = arith.constant 1 : i32
    %6 = arith.subi %5, %c1_i32 : i32
    %7 = arith.cmpi sle, %1, %6 : i32
    %8 = arith.extui %7 : i1 to i32
    %c0_i32_3 = arith.constant 0 : i32
    %9 = arith.cmpi ne, %8, %c0_i32_3 : i32
    scf.if %9 {
      %c0 = arith.constant 0 : index
      %c0_6 = arith.constant 0 : index
      %13 = vector.load %arg2[%c0, %c0_6] : memref<8x128xf32, #tpu.memory_space<vmem>>, vector<8x128xf32>
      %c0_7 = arith.constant 0 : index
      %c0_8 = arith.constant 0 : index
      %14 = vector.load %arg3[%c0_7, %c0_8] : memref<8x128xf32, #tpu.memory_space<vmem>>, vector<8x128xf32>
      %15 = vector.extract_strided_slice %13 {offsets = [0, 0], sizes = [8, 16], strides = [1, 1]} : vector<8x128xf32> to vector<8x16xf32>
      %16 = vector.extract_strided_slice %13 {offsets = [0, 16], sizes = [8, 16], strides = [1, 1]} : vector<8x128xf32> to vector<8x16xf32>
      %17 = vector.extract_strided_slice %13 {offsets = [0, 32], sizes = [8, 16], strides = [1, 1]} : vector<8x128xf32> to vector<8x16xf32>
      %18 = vector.extract_strided_slice %13 {offsets = [0, 48], sizes = [8, 16], strides = [1, 1]} : vector<8x128xf32> to vector<8x16xf32>
      %19 = vector.shape_cast %15 : vector<8x16xf32> to vector<1x8x16xf32>
      %20 = vector.shape_cast %16 : vector<8x16xf32> to vector<1x8x16xf32>
      %21 = vector.shape_cast %17 : vector<8x16xf32> to vector<1x8x16xf32>
      %22 = vector.shape_cast %18 : vector<8x16xf32> to vector<1x8x16xf32>
      %23 = tpu.concatenate %19, %20, %21, %22 in 0 : vector<1x8x16xf32>, vector<1x8x16xf32>, vector<1x8x16xf32>, vector<1x8x16xf32> -> vector<4x8x16xf32>
      %24 = vector.extract_strided_slice %14 {offsets = [0, 64], sizes = [8, 16], strides = [1, 1]} : vector<8x128xf32> to vector<8x16xf32>
      %25 = vector.extract_strided_slice %14 {offsets = [0, 64], sizes = [8, 16], strides = [1, 1]} : vector<8x128xf32> to vector<8x16xf32>
      %26 = vector.extract_strided_slice %14 {offsets = [0, 80], sizes = [8, 16], strides = [1, 1]} : vector<8x128xf32> to vector<8x16xf32>
      %27 = vector.extract_strided_slice %14 {offsets = [0, 80], sizes = [8, 16], strides = [1, 1]} : vector<8x128xf32> to vector<8x16xf32>
      %28 = vector.shape_cast %24 : vector<8x16xf32> to vector<1x8x16xf32>
      %29 = vector.shape_cast %25 : vector<8x16xf32> to vector<1x8x16xf32>
      %30 = vector.shape_cast %26 : vector<8x16xf32> to vector<1x8x16xf32>
      %31 = vector.shape_cast %27 : vector<8x16xf32> to vector<1x8x16xf32>
      %32 = tpu.concatenate %28, %29, %30, %31 in 0 : vector<1x8x16xf32>, vector<1x8x16xf32>, vector<1x8x16xf32>, vector<1x8x16xf32> -> vector<4x8x16xf32>
      %33 = vector.extract_strided_slice %14 {offsets = [0, 96], sizes = [8, 16], strides = [1, 1]} : vector<8x128xf32> to vector<8x16xf32>
      %34 = vector.extract_strided_slice %14 {offsets = [0, 96], sizes = [8, 16], strides = [1, 1]} : vector<8x128xf32> to vector<8x16xf32>
      %35 = vector.extract_strided_slice %14 {offsets = [0, 112], sizes = [8, 16], strides = [1, 1]} : vector<8x128xf32> to vector<8x16xf32>
      %36 = vector.extract_strided_slice %14 {offsets = [0, 112], sizes = [8, 16], strides = [1, 1]} : vector<8x128xf32> to vector<8x16xf32>
      %37 = vector.shape_cast %33 : vector<8x16xf32> to vector<1x8x16xf32>
      %38 = vector.shape_cast %34 : vector<8x16xf32> to vector<1x8x16xf32>
      %39 = vector.shape_cast %35 : vector<8x16xf32> to vector<1x8x16xf32>
      %40 = vector.shape_cast %36 : vector<8x16xf32> to vector<1x8x16xf32>
      %41 = tpu.concatenate %37, %38, %39, %40 in 0 : vector<1x8x16xf32>, vector<1x8x16xf32>, vector<1x8x16xf32>, vector<1x8x16xf32> -> vector<4x8x16xf32>
      %42 = tpu.iota {dimensions = array<i32: 0>} : vector<8x8xi32>
      %43 = vector.broadcast %0 : i32 to vector<8x8xi32>
      %44 = arith.addi %43, %42 : vector<8x8xi32>
      %45 = tpu.iota {dimensions = array<i32: 1>} : vector<8x8xi32>
      %46 = vector.broadcast %1 : i32 to vector<8x8xi32>
      %47 = arith.addi %46, %45 : vector<8x8xi32>
      %48 = arith.cmpi sle, %47, %44 : vector<8x8xi32>
      %49 = vector.shape_cast %48 : vector<8x8xi1> to vector<1x8x8xi1>
      "tpu.trace_start"() <{level = 10 : i32, message = "hqd,hkd->hqk"}> : () -> ()
      %cst = arith.constant dense<0.000000e+00> : vector<4x8x8xf32>
      %50 = tpu.matmul %23, %32, %cst {dimension_numbers = #tpu.dot_dimension_numbers<[2], [2], [1], [1], [0, 0, 0, 1, 1, 1], [0], [0]>, precision = #tpu.contract_precision<fp32>} : vector<4x8x16xf32>, vector<4x8x16xf32>, vector<4x8x8xf32> -> vector<4x8x8xf32>
      %cst_9 = arith.constant -1.000000e+30 : f32
      "tpu.trace_stop"() : () -> ()
      %51 = vector.shape_cast %49 : vector<1x8x8xi1> to vector<1x8x8xi1>
      %52 = vector.broadcast %51 : vector<1x8x8xi1> to vector<4x8x8xi1>
      %53 = vector.broadcast %cst_9 : f32 to vector<4x8x8xf32>
      %54 = arith.select %52, %50, %53 : vector<4x8x8xi1>, vector<4x8x8xf32>
      %c0_10 = arith.constant 0 : index
      %c0_11 = arith.constant 0 : index
      %c0_12 = arith.constant 0 : index
      %55 = vector.load %arg6[%c0_10, %c0_11, %c0_12] : memref<4x8x1xf32, #tpu.memory_space<vmem>>, vector<4x8x1xf32>
      %cst_13 = arith.constant dense<0xFF800000> : vector<4x8xf32>
      %56 = vector.multi_reduction <maximumf>, %54, %cst_13 [2] : vector<4x8x8xf32> to vector<4x8xf32>
      %57 = vector.shape_cast %56 : vector<4x8xf32> to vector<4x8x1xf32>
      %58 = arith.maximumf %55, %57 : vector<4x8x1xf32>
      %59 = arith.subf %55, %58 : vector<4x8x1xf32>
      %60 = math.exp %59 : vector<4x8x1xf32>
      %61 = vector.broadcast %58 : vector<4x8x1xf32> to vector<4x8x8xf32>
      %62 = arith.subf %54, %61 : vector<4x8x8xf32>
      %63 = math.exp %62 : vector<4x8x8xf32>
      %c0_14 = arith.constant 0 : index
      %c0_15 = arith.constant 0 : index
      %c0_16 = arith.constant 0 : index
      %64 = vector.load %arg7[%c0_14, %c0_15, %c0_16] : memref<4x8x1xf32, #tpu.memory_space<vmem>>, vector<4x8x1xf32>
      %65 = arith.mulf %60, %64 : vector<4x8x1xf32>
      %cst_17 = arith.constant dense<0.000000e+00> : vector<4x8xf32>
      %66 = vector.multi_reduction <add>, %63, %cst_17 [2] : vector<4x8x8xf32> to vector<4x8xf32>
      %67 = vector.shape_cast %66 : vector<4x8xf32> to vector<4x8x1xf32>
      %68 = arith.addf %65, %67 : vector<4x8x1xf32>
      %c0_18 = arith.constant 0 : index
      %c0_19 = arith.constant 0 : index
      %c0_20 = arith.constant 0 : index
      %69 = vector.load %arg7[%c0_18, %c0_19, %c0_20] : memref<4x8x1xf32, #tpu.memory_space<vmem>>, vector<4x8x1xf32>
      tpu.vector_store %arg7[%c0_18, %c0_19, %c0_20], %68 {strides = array<i32>} : memref<4x8x1xf32, #tpu.memory_space<vmem>>, vector<4x8x1xf32>,
      %c0_21 = arith.constant 0 : index
      %c0_22 = arith.constant 0 : index
      %c0_23 = arith.constant 0 : index
      %70 = vector.load %arg8[%c0_21, %c0_22, %c0_23] : memref<4x8x16xf32, #tpu.memory_space<vmem>>, vector<4x8x16xf32>
      %71 = vector.broadcast %60 : vector<4x8x1xf32> to vector<4x8x16xf32>
      %72 = arith.mulf %71, %70 : vector<4x8x16xf32>
      "tpu.trace_start"() <{level = 10 : i32, message = "hqk,hkd->hqd"}> : () -> ()
      %cst_24 = arith.constant dense<0.000000e+00> : vector<4x8x16xf32>
      %73 = tpu.matmul %63, %41, %cst_24 {dimension_numbers = #tpu.dot_dimension_numbers<[2], [1], [1], [2], [0, 0, 0, 1, 1, 2], [0], [0]>, precision = #tpu.contract_precision<fp32>} : vector<4x8x8xf32>, vector<4x8x16xf32>, vector<4x8x16xf32> -> vector<4x8x16xf32>
      "tpu.trace_stop"() : () -> ()
      %74 = arith.addf %72, %73 : vector<4x8x16xf32>
      %c0_25 = arith.constant 0 : index
      %c0_26 = arith.constant 0 : index
      %c0_27 = arith.constant 0 : index
      %75 = vector.load %arg8[%c0_25, %c0_26, %c0_27] : memref<4x8x16xf32, #tpu.memory_space<vmem>>, vector<4x8x16xf32>
      tpu.vector_store %arg8[%c0_25, %c0_26, %c0_27], %74 {strides = array<i32>} : memref<4x8x16xf32, #tpu.memory_space<vmem>>, vector<4x8x16xf32>,
      %c0_28 = arith.constant 0 : index
      %c0_29 = arith.constant 0 : index
      %c0_30 = arith.constant 0 : index
      %76 = vector.load %arg6[%c0_28, %c0_29, %c0_30] : memref<4x8x1xf32, #tpu.memory_space<vmem>>, vector<4x8x1xf32>
      tpu.vector_store %arg6[%c0_28, %c0_29, %c0_30], %58 {strides = array<i32>} : memref<4x8x1xf32, #tpu.memory_space<vmem>>, vector<4x8x1xf32>,
    } else {
    }
    %c0_i32_4 = arith.constant 0 : i32
    %10 = arith.cmpi eq, %arg1, %c0_i32_4 : i32
    %11 = arith.extui %10 : i1 to i32
    %c0_i32_5 = arith.constant 0 : i32
    %12 = arith.cmpi ne, %11, %c0_i32_5 : i32
    scf.if %12 {
      %c0 = arith.constant 0 : index
      %c0_6 = arith.constant 0 : index
      %c0_7 = arith.constant 0 : index
      %13 = vector.load %arg8[%c0, %c0_6, %c0_7] : memref<4x8x16xf32, #tpu.memory_space<vmem>>, vector<4x8x16xf32>
      %c0_8 = arith.constant 0 : index
      %c0_9 = arith.constant 0 : index
      %c0_10 = arith.constant 0 : index
      %14 = vector.load %arg7[%c0_8, %c0_9, %c0_10] : memref<4x8x1xf32, #tpu.memory_space<vmem>>, vector<4x8x1xf32>
      %15 = vector.broadcast %14 : vector<4x8x1xf32> to vector<4x8x16xf32>
      %16 = arith.divf %13, %15 : vector<4x8x16xf32>
      %c0_11 = arith.constant 0 : index
      %c0_12 = arith.constant 0 : index
      %c0_13 = arith.constant 0 : index
      %17 = vector.load %arg4[%c0_11, %c0_12, %c0_13] : memref<4x16x64xf32, #tpu.memory_space<vmem>>, vector<4x16x64xf32>
      "tpu.trace_start"() <{level = 10 : i32, message = "hqd,hde->hqe"}> : () -> ()
      %cst = arith.constant dense<0.000000e+00> : vector<4x8x64xf32>
      %18 = tpu.matmul %16, %17, %cst {dimension_numbers = #tpu.dot_dimension_numbers<[2], [1], [1], [2], [0, 0, 0, 1, 1, 2], [0], [0]>, precision = #tpu.contract_precision<fp32>} : vector<4x8x16xf32>, vector<4x16x64xf32>, vector<4x8x64xf32> -> vector<4x8x64xf32>
      "tpu.trace_stop"() : () -> ()
      %cst_14 = arith.constant dense<0.000000e+00> : vector<8x64xf32>
      %19 = vector.multi_reduction <add>, %18, %cst_14 [0] : vector<4x8x64xf32> to vector<8x64xf32>
      %c0_15 = arith.constant 0 : index
      %c0_16 = arith.constant 0 : index
      %20 = vector.load %arg5[%c0_15, %c0_16] : memref<8x64xf32, #tpu.memory_space<vmem>>, vector<8x64xf32>
      tpu.vector_store %arg5[%c0_15, %c0_16], %19 {strides = array<i32>} : memref<8x64xf32, #tpu.memory_space<vmem>>, vector<8x64xf32>,
    } else {
    }
    return
  }
  func.func @transform_0(%arg0: i32, %arg1: i32) -> (i32, i32) {
    %c0_i32 = arith.constant 0 : i32
    %c0_i32_0 = arith.constant 0 : i32
    return %arg0, %c0_i32 : i32, i32
  }
  func.func @transform_1(%arg0: i32, %arg1: i32) -> (i32, i32) {
    %c0_i32 = arith.constant 0 : i32
    %c0_i32_0 = arith.constant 0 : i32
    return %arg1, %c0_i32 : i32, i32
  }
  func.func @transform_2(%arg0: i32, %arg1: i32) -> (i32, i32, i32) {
    %c0_i32 = arith.constant 0 : i32
    %c0_i32_0 = arith.constant 0 : i32
    %c0_i32_1 = arith.constant 0 : i32
    %c0_i32_2 = arith.constant 0 : i32
    return %c0_i32, %c0_i32_0, %c0_i32_1 : i32, i32, i32
  }
  func.func @transform_3(%arg0: i32, %arg1: i32) -> (i32, i32) {
    %c0_i32 = arith.constant 0 : i32
    %c0_i32_0 = arith.constant 0 : i32
    return %arg0, %c0_i32 : i32, i32
  }
}

</mosaic_0001>

<bundles_post_ra>
// kernel: tile.24
= control target key start
LH: loop header
LB: loop body
LE: loop exit
PB: predicated region body
PF: predicated region fallthrough
CT: control target
= control target key end

     0   :  { %vm4_vm0 = vcmask 1047556   ;;  %s99_s14 = smov 56   ;;  %s100_s19 = smov 40   ;;  %vm6_vm1 = vcmask 64512   ;;  %vm16_vm2 = vcmask 523712   ;;  %vm26_vm3 = vcmask 458112   ;;  %s196_s0 = inlined_call_operand.vmem [shape: f32[8,8,8], index: 0, kind: input, shape index: {}]   ;;  %s197_s1 = inlined_call_operand.vmem [shape: f32[8,64], index: 1, kind: output, shape index: {}]  }
   0x1   :  { %v78_v0 = vld [vmem:[%s196_s0 + $0x7] ss:$8 sm:$0xf]   ;;  %v82_v3 = vld [vmem:[%s196_s0 + $0x5] ss:$8 sm:$0xf]  }
   0x2   :  { %v79_v1 = vld [vmem:[%s196_s0 + $0x7] ss:$8 sm:$0xf0]   ;;  %v83_v4 = vld [vmem:[%s196_s0 + $0x5] ss:$8 sm:$0xf0]  }
   0x3   :  { %v13_v2 = vsel %vm4_vm0, %v79_v1, %v78_v0  ;;  %v33_v5 = vsel %vm4_vm0, %v83_v4, %v82_v3  ;;  %v80_v6 = vld [vmem:[%s196_s0 + $0x6] ss:$8 sm:$0xf]   ;;  %v84_v9 = vld [vmem:[%s196_s0 + $0x4] ss:$8 sm:$0xf]  }
   0x4   :  { %14 = vrot.lane.b32.xlu0 %v13_v2, %s99_s14  ;;  %v81_v7 = vld [vmem:[%s196_s0 + $0x6] ss:$8 sm:$0xf0]   ;;  %34 = vrot.lane.b32.xlu1 %v33_v5, %s100_s19  ;;  %v85_v10 = vld [vmem:[%s196_s0 + $0x4] ss:$8 sm:$0xf0]  }
   0x5   :  { %v23_v8 = vsel %vm4_vm0, %v81_v7, %v80_v6  ;;  %v86_v11 = vld [vmem:[%s196_s0 + $0x3] ss:$8 sm:$0xf]   ;;  %v43_v12 = vsel %vm4_vm0, %v85_v10, %v84_v9  ;;  %s101_s28 = smov 48   ;;  %s102_s4 = smov 32   ;;  %vm36_vm4 = vcmask 392512  }
   0x6   :  { %v87_v13 = vld [vmem:[%s196_s0 + $0x3] ss:$8 sm:$0xf0]   ;;  %v88_v14 = vld [vmem:[%s196_s0 + $0x2] ss:$8 sm:$0xf]  }
   0x7   :  { %v89_v15 = vld [vmem:[%s196_s0 + $0x2] ss:$8 sm:$0xf0]   ;;  %v53_v16 = vsel %vm4_vm0, %v87_v13, %v86_v11  ;;  %v90_v17 = vld [vmem:[%s196_s0 + $0x1] ss:$8 sm:$0xf]  }
   0x8   :  { %24 = vrot.lane.b32.xlu0 %v23_v8, %s101_s28  ;;  %44 = vrot.lane.b32.xlu1 %v43_v12, %s102_s4  ;;  %v63_v18 = vsel %vm4_vm0, %v89_v15, %v88_v14  ;;  %v91_v19 = vld [vmem:[%s196_s0 + $0x1] ss:$8 sm:$0xf0]   ;;  %v2_v20 = vld [vmem:[%s196_s0] ss:$8 sm:$0xf]  }
   0x9   :  { %v3_v21 = vld [vmem:[%s196_s0] ss:$8 sm:$0xf0]   ;;  %s103_s0 = smov 24   ;;  %s104_s13 = smov 16   ;;  %v73_v23 = vsel %vm4_vm0, %v91_v19, %v90_v17  ;;  %vm46_vm5 = vcmask 326912  }
   0xa   :  { %v5_v22 = vsel %vm4_vm0, %v3_v21, %v2_v20  ;;  %s105_s16 = smov 8   ;;  %vm56_vm6 = vcmask 261312   ;;  %vm66_vm7 = vcmask 195712   ;;  %vm76_vm8 = vcmask 130112  }
   0xb   :  { %7 = vst.msk [vmem:[%s197_s1] sm:$0xff] %vm6_vm1, %v5_v22  }
   0xc   :  { %54 = vrot.lane.b32.xlu0 %v53_v16, %s103_s0  ;;  %64 = vrot.lane.b32.xlu1 %v63_v18, %s104_s13 }
  0x10   :  { %74 = vrot.lane.b32.xlu0 %v73_v23, %s105_s16 }
  0x76   :  { %v15_v24 = vpop.permute.xlu0 %14   ;;  %v35_v25 = vpop.permute.xlu1 %34  }
  0x77   :  { %17 = vst.msk [vmem:[%s197_s1] sm:$0xff] %vm16_vm2, %v15_v24  }
  0x7a   :  { %v25_v26 = vpop.permute.xlu0 %24   ;;  %v45_v27 = vpop.permute.xlu1 %44  }
  0x7b   :  { %27 = vst.msk [vmem:[%s197_s1] sm:$0xff] %vm26_vm3, %v25_v26  }
  0x7c   :  { %37 = vst.msk [vmem:[%s197_s1] sm:$0xff] %vm36_vm4, %v35_v25  }
  0x7d   :  { %47 = vst.msk [vmem:[%s197_s1] sm:$0xff] %vm46_vm5, %v45_v27  }
  0x7e   :  { %v55_v28 = vpop.permute.xlu0 %54   ;;  %v65_v29 = vpop.permute.xlu1 %64  }
  0x7f   :  { %57 = vst.msk [vmem:[%s197_s1] sm:$0xff] %vm56_vm6, %v55_v28  }
  0x80   :  { %67 = vst.msk [vmem:[%s197_s1] sm:$0xff] %vm66_vm7, %v65_v29  }
  0x82   :  { %v75_v30 = vpop.permute.xlu0 %74  }
  0x83   :  { %77 = vst.msk [vmem:[%s197_s1] sm:$0xff] %vm76_vm8, %v75_v30  }

// kernel: tile.29
= control target key start
LH: loop header
LB: loop body
LE: loop exit
PB: predicated region body
PF: predicated region fallthrough
CT: control target
= control target key end

     0   :  { %vm42_vm0 = vcmask 1047556   ;;  %vm44_vm1 = vcmask 64512   ;;  %s93_s22 = smov 8   ;;  %s94_s25 = smov 16   ;;  %vm54_vm2 = vcmask 261312   ;;  %vm64_vm3 = vcmask 195712   ;;  %s146_s0 = inlined_call_operand.vmem [shape: f32[8,4,8], index: 0, kind: input, shape index: {}]   ;;  %s147_s1 = inlined_call_operand.vmem [shape: f32[8,32], index: 1, kind: output, shape index: {}]  }
   0x1   :  { %v82_v0 = vld [vmem:[%s146_s0 + $0x1c] sm:$0xf]  ;;  %v83_v1 = vld [vmem:[%s146_s0 + $0x18] sm:$0xf]  ;;  %v84_v2 = vld [vmem:[%s146_s0 + $0x14] sm:$0xf] }
   0x2   :  { %8 = vst [vmem:[#allocation0 + $0x38] sm:$0xf] %v82_v0  ;;  %13 = vst [vmem:[#allocation0 + $0x30] sm:$0xf] %v83_v1  ;;  %v85_v3 = vld [vmem:[%s146_s0 + $0x10] sm:$0xf] }
   0x3   :  { %18 = vst [vmem:[#allocation0 + $0x28] sm:$0xf] %v84_v2  ;;  %v86_v4 = vld [vmem:[%s146_s0 + $0xc] sm:$0xf]  ;;  %v87_v5 = vld [vmem:[%s146_s0 + $0x8] sm:$0xf] }
   0x4   :  { %23 = vst [vmem:[#allocation0 + $0x20] sm:$0xf] %v85_v3  ;;  %28 = vst [vmem:[#allocation0 + $0x18] sm:$0xf] %v86_v4  ;;  %v88_v6 = vld [vmem:[%s146_s0 + $0x4] sm:$0xf] }
   0x5   :  { %33 = vst [vmem:[#allocation0 + $0x10] sm:$0xf] %v87_v5  ;;  %v38_v7 = vld [vmem:[%s146_s0] sm:$0xf]  ;;  %37 = vst [vmem:[#allocation0 + $0x8] sm:$0xf] %v88_v6 }
   0x6   :  { %39 = vst [vmem:[#allocation0] sm:$0xf] %v38_v7  ;;  %s92_s0 = smov 24   ;;  %vm74_vm4 = vcmask 130112  }
   0xb   :  { %v49_v8 = vld [vmem:[#allocation0 + $0x3] ss:$8 sm:$0xf0]   ;;  %v59_v9 = vld [vmem:[#allocation0 + $0x2] ss:$8 sm:$0xf0]  }
   0xc   :  { %v69_v14 = vld [vmem:[#allocation0 + $0x1] ss:$8 sm:$0xf0]   ;;  %v41_v17 = vld [vmem:[#allocation0] ss:$8 sm:$0xf0]  }
   0xd   :  { %v47_v10 = vld [vmem:[#allocation0 + $0x3] ss:$8 sm:$0xf]   ;;  %v57_v11 = vld [vmem:[#allocation0 + $0x2] ss:$8 sm:$0xf]  }
   0xe   :  { %v51_v12 = vsel %vm42_vm0, %v49_v8, %v47_v10  ;;  %v67_v13 = vld [vmem:[#allocation0 + $0x1] ss:$8 sm:$0xf]   ;;  %v40_v16 = vld [vmem:[#allocation0] ss:$8 sm:$0xf]   ;;  %v61_v18 = vsel %vm42_vm0, %v59_v9, %v57_v11 }
   0xf   :  { %52 = vrot.lane.b32.xlu0 %v51_v12, %s92_s0  ;;  %v71_v15 = vsel %vm42_vm0, %v69_v14, %v67_v13  ;;  %v43_v19 = vsel %vm42_vm0, %v41_v17, %v40_v16 }
  0x10   :  { %72 = vrot.lane.b32.xlu1 %v71_v15, %s93_s22  ;;  %45 = vst.msk [vmem:[%s147_s1] sm:$0xff] %vm44_vm1, %v43_v19  }
  0x13   :  { %62 = vrot.lane.b32.xlu0 %v61_v18, %s94_s25 }
  0x81   :  { %v53_v20 = vpop.permute.xlu0 %52  }
  0x82   :  { %55 = vst.msk [vmem:[%s147_s1] sm:$0xff] %vm54_vm2, %v53_v20   ;;  %v73_v21 = vpop.permute.xlu1 %72  }
  0x85   :  { %v63_v22 = vpop.permute.xlu0 %62  }
  0x86   :  { %65 = vst.msk [vmem:[%s147_s1] sm:$0xff] %vm64_vm3, %v63_v22  }
  0x87   :  { %75 = vst.msk [vmem:[%s147_s1] sm:$0xff] %vm74_vm4, %v73_v21  }

// kernel: qwen2_attention.2
= control target key start
LH: loop header
LB: loop body
LE: loop exit
PB: predicated region body
PF: predicated region fallthrough
CT: control target
= control target key end

     0   :  { %v819_v3 = vmov 0.0   ;;  %vm49_vm0 = vcmask 523264   ;;  %s1051_s1 = inlined_call_operand.vmem [shape: f32[64,256], index: 1, kind: input, shape index: {}]   ;;  %s1052_s0 = inlined_call_operand.vmem [shape: f32[8,64], index: 0, kind: input, shape index: {}]   ;;  %s1053_s2 = inlined_call_operand.vmem [shape: f32[1,256], index: 2, kind: input, shape index: {}]   ;;  %s1054_s3 = inlined_call_operand.vmem [shape: f32[8,128], index: 3, kind: input, shape index: {}]   ;;  %s1055_s4 = inlined_call_operand.vmem [shape: f32[8,128], index: 4, kind: input, shape index: {}]   ;;  %s1056_s5 = inlined_call_operand.vmem [shape: f32[8,128], index: 5, kind: output, shape index: {}]  }
   0x1   :  { %v22_v0 = vld [vmem:[%s1051_s1 + $0x8] sm:$0xff]  ;;  %v24_v1 = vld [vmem:[%s1051_s1 + $0x18] sm:$0xff]  ;;  %v21_v2 = vld [vmem:[%s1051_s1] sm:$0xff]  ;;  %133 = vmatprep.mubr.f32.mxu1 %v819_v3  ;;  %482 = vmatprep.mubr.f32.mxu0 %v819_v3 }
   0x2   :  { %v53_v4 = vand.u32 4294901760, %v22_v0  ;;  %v57_v5 = vand.u32 4294901760, %v24_v1  ;;  %v23_v6 = vld [vmem:[%s1051_s1 + $0x10] sm:$0xff]  ;;  %v55_v7 = vand.u32 4294901760, %v21_v2  ;;  %v26_v8 = vld [vmem:[%s1051_s1 + $0x28] sm:$0xff]  ;;  %v28_v9 = vld [vmem:[%s1051_s1 + $0x38] sm:$0xff] }
   0x3   :  { %v59_v10 = vand.u32 4294901760, %v23_v6  ;;  %v61_v11 = vand.u32 4294901760, %v26_v8  ;;  %v65_v12 = vand.u32 4294901760, %v28_v9  ;;  %v25_v13 = vld [vmem:[%s1051_s1 + $0x20] sm:$0xff]  ;;  %v27_v14 = vld [vmem:[%s1051_s1 + $0x30] sm:$0xff]  ;;  %v30_v15 = vld [vmem:[%s1051_s1 + $0x48] sm:$0xff] }
   0x4   :  { %v879_v16 = vpack.c.bf16 %v57_v5, %v53_v4  ;;  %v881_v17 = vsub.f32 %v22_v0, %v53_v4  ;;  %v883_v18 = vsub.f32 %v24_v1, %v57_v5  ;;  %v32_v19 = vld [vmem:[%s1051_s1 + $0x58] sm:$0xff]  ;;  %v29_v20 = vld [vmem:[%s1051_s1 + $0x40] sm:$0xff]  ;;  %v31_v21 = vld [vmem:[%s1051_s1 + $0x50] sm:$0xff]  ;;  %v896_v23 = vsub.f32 %v21_v2, %v55_v7 }
   0x5   :  { %v894_v22 = vpack.c.bf16 %v59_v10, %v55_v7  ;;  %v898_v24 = vsub.f32 %v23_v6, %v59_v10  ;;  %v900_v25 = vpack.c.bf16 %v65_v12, %v61_v11  ;;  %v34_v26 = vld [vmem:[%s1051_s1 + $0x68] sm:$0xff]  ;;  %v36_v27 = vld [vmem:[%s1051_s1 + $0x78] sm:$0xff]  ;;  %v910_v28 = vsub.f32 %v26_v8, %v61_v11  ;;  %v33_v40 = vld [vmem:[%s1051_s1 + $0x60] sm:$0xff] }
   0x6   :  { %711 = vmatprep.subr.bf16.mxu1 %v879_v16  ;;  %759 = vmatprep.subr.bf16.mxu0 %v879_v16  ;;  %v63_v29 = vand.u32 4294901760, %v25_v13  ;;  %v67_v30 = vand.u32 4294901760, %v27_v14  ;;  %v69_v31 = vand.u32 4294901760, %v30_v15  ;;  %v73_v32 = vand.u32 4294901760, %v32_v19  ;;  %v35_v41 = vld [vmem:[%s1051_s1 + $0x70] sm:$0xff]  ;;  %v20_v46 = vld [vmem:[%s1052_s0] sm:$0xff] }
   0x7   :  { %713 = vmatpush1.bf16.msra.mxu1 %v894_v22  ;;  %761 = vmatpush1.bf16.msra.mxu0 %v894_v22  ;;  %v71_v33 = vand.u32 4294901760, %v29_v20  ;;  %v75_v34 = vand.u32 4294901760, %v31_v21  ;;  %v77_v35 = vand.u32 4294901760, %v34_v26  ;;  %v915_v36 = vsub.f32 %v28_v9, %v65_v12 }
   0x8   :  { %715 = vmatprep.subr.bf16.mxu1 %v900_v25  ;;  %763 = vmatprep.subr.bf16.mxu0 %v900_v25  ;;  %v918_v37 = vpack.c.bf16 %v67_v30, %v63_v29  ;;  %v920_v38 = vsub.f32 %v25_v13, %v63_v29  ;;  %v81_v39 = vand.u32 4294901760, %v36_v27  ;;  %v928_v42 = vsub.f32 %v27_v14, %v67_v30 }
   0x9   :  { %v930_v43 = vpack.c.bf16 %v73_v32, %v69_v31  ;;  %v932_v44 = vsub.f32 %v30_v15, %v69_v31  ;;  %v934_v45 = vsub.f32 %v32_v19, %v73_v32  ;;  %v939_v47 = vpack.c.bf16 %v75_v34, %v71_v33 }
   0xa   :  { %v941_v48 = vsub.f32 %v29_v20, %v71_v33  ;;  %v943_v49 = vsub.f32 %v31_v21, %v75_v34  ;;  %v945_v50 = vpack.c.bf16 %v81_v39, %v77_v35  ;;  %v949_v51 = vsub.f32 %v34_v26, %v77_v35 }
   0xb   :  { %717 = vmatpush1.bf16.msra.mxu1 %v918_v37  ;;  %765 = vmatpush1.bf16.msra.mxu0 %v918_v37  ;;  %v79_v52 = vand.u32 4294901760, %v33_v40  ;;  %v83_v53 = vand.u32 4294901760, %v35_v41  ;;  %v147_v54 = vand.u32 4294901760, %v881_v17  ;;  %v159_v55 = vand.u32 4294901760, %v883_v18 }
   0xc   :  { %719 = vmatprep.subr.bf16.mxu1 %v930_v43  ;;  %767 = vmatprep.subr.bf16.mxu0 %v930_v43  ;;  %v51_v56 = vsel %vm49_vm0, %v20_v46, 0  ;;  %v153_v57 = vand.u32 4294901760, %v896_v23  ;;  %v165_v58 = vand.u32 4294901760, %v898_v24  ;;  %v958_v59 = vsub.f32 %v36_v27, %v81_v39 }
   0xd   :  { %v960_v60 = vpack.c.bf16 %v83_v53, %v79_v52  ;;  %v962_v61 = vsub.f32 %v33_v40, %v79_v52  ;;  %v148_v62 = vsub.f32 %v881_v17, %v147_v54  ;;  %v965_v63 = vsub.f32 %v35_v41, %v83_v53 }
   0xe   :  { %v160_v0 = vsub.f32 %v883_v18, %v159_v55  ;;  %v968_v1 = vand.u32 4294901760, %v51_v56  ;;  %v154_v2 = vsub.f32 %v896_v23, %v153_v57  ;;  %v774_v5 = vpack.c.bf16 %v159_v55, %v147_v54 }
   0xf   :  { %721 = vmatpush1.bf16.msra.mxu1 %v939_v47  ;;  %769 = vmatpush1.bf16.msra.mxu0 %v939_v47  ;;  %v149_v4 = vand.u32 4294901760, %v148_v62  ;;  %v166_v6 = vsub.f32 %v898_v24, %v165_v58  ;;  %v171_v7 = vand.u32 4294901760, %v910_v28  ;;  %v183_v11 = vand.u32 4294901760, %v915_v36 }
  0x10   :  { %723 = vmatprep.subr.bf16.mxu1 %v945_v50  ;;  %771 = vmatprep.subr.bf16.mxu0 %v945_v50  ;;  %v161_v8 = vand.u32 4294901760, %v160_v0  ;;  %v978_v9 = vsub.f32 %v51_v56, %v968_v1  ;;  %v155_v10 = vand.u32 4294901760, %v154_v2  ;;  %v177_v14 = vand.u32 4294901760, %v920_v38 }
  0x11   :  { %v167_v12 = vand.u32 4294901760, %v166_v6  ;;  %v172_v13 = vsub.f32 %v910_v28, %v171_v7  ;;  %v189_v15 = vand.u32 4294901760, %v928_v42  ;;  %v776_v21 = vpack.c.bf16 %v165_v58, %v153_v57 }
  0x12   :  { %v726_v19 = vpack.c.bf16 %v161_v8, %v149_v4  ;;  %v136_v20 = vand.u32 4294901760, %v978_v9  ;;  %v184_v26 = vsub.f32 %v915_v36, %v183_v11  ;;  %v778_v29 = vpack.c.bf16 %v183_v11, %v171_v7 }
  0x13   :  { %725 = vmatpush1.bf16.msra.mxu1 %v960_v60  ;;  %773 = vmatpush1.bf16.msra.mxu0 %v960_v60  ;;  %v173_v27 = vand.u32 4294901760, %v172_v13  ;;  %v178_v30 = vsub.f32 %v920_v38, %v177_v14  ;;  %v190_v31 = vsub.f32 %v928_v42, %v189_v15  ;;  %v728_v33 = vpack.c.bf16 %v167_v12, %v155_v10 }
  0x14   :  { %727 = vmatprep.subr.bf16.mxu1 %v726_v19  ;;  %775 = vmatprep.subr.bf16.mxu0 %v774_v5  ;;  %v137_v32 = vsub.f32 %v978_v9, %v136_v20  ;;  %v185_v34 = vand.u32 4294901760, %v184_v26  ;;  %v195_v35 = vand.u32 4294901760, %v932_v44  ;;  %v207_v41 = vand.u32 4294901760, %v934_v45 }
  0x15   :  { %v179_v39 = vand.u32 4294901760, %v178_v30  ;;  %v191_v40 = vand.u32 4294901760, %v190_v31  ;;  %v201_v46 = vand.u32 4294901760, %v941_v48  ;;  %v213_v55 = vand.u32 4294901760, %v943_v49 }
  0x16   :  { %v138_v52 = vand.u32 4294901760, %v137_v32  ;;  %486 = vmatmul.mubr.f32.vlgmr.msra.gmra.mrb[0].mxu0 %v136_v20  ;;  %v730_v53 = vpack.c.bf16 %v185_v34, %v173_v27  ;;  %v196_v54 = vsub.f32 %v932_v44, %v195_v35  ;;  %v780_v57 = vpack.c.bf16 %v189_v15, %v177_v14 }
  0x17   :  { %777 = vmatpush1.bf16.msra.mxu0 %v776_v21  ;;  %v732_v56 = vpack.c.bf16 %v191_v40, %v179_v39  ;;  %v208_v58 = vsub.f32 %v934_v45, %v207_v41  ;;  %v202_v62 = vsub.f32 %v941_v48, %v201_v46  ;;  %v782_v2 = vpack.c.bf16 %v207_v41, %v195_v35 }
  0x18   :  { %139 = vmatmul.mubr.f32.vlgmr.msra.gmra.mrb[0].mxu1 %v138_v52  ;;  %779 = vmatprep.subr.bf16.mxu0 %v778_v29  ;;  %v197_v0 = vand.u32 4294901760, %v196_v54  ;;  %v214_v4 = vsub.f32 %v943_v49, %v213_v55  ;;  %v219_v5 = vand.u32 4294901760, %v949_v51  ;;  %v231_v8 = vand.u32 4294901760, %v958_v59 }
  0x19   :  { %729 = vmatpush1.bf16.msra.mxu1 %v728_v33  ;;  %v209_v6 = vand.u32 4294901760, %v208_v58  ;;  %v203_v7 = vand.u32 4294901760, %v202_v62  ;;  %v225_v10 = vand.u32 4294901760, %v962_v61  ;;  %289 = vmatprep.mubr.f32.mxu1 %v819_v3  ;;  %v237_v13 = vand.u32 4294901760, %v965_v63 }
  0x1a   :  { %731 = vmatprep.subr.bf16.mxu1 %v730_v53  ;;  %v215_v11 = vand.u32 4294901760, %v214_v4  ;;  %v220_v12 = vsub.f32 %v949_v51, %v219_v5  ;;  %604 = vmatprep.mubr.f32.mxu0 %v819_v3  ;;  %v784_v15 = vpack.c.bf16 %v213_v55, %v201_v46  ;;  %v232_v19 = vsub.f32 %v958_v59, %v231_v8 }
  0x1b   :  { %781 = vmatpush1.bf16.msra.mxu0 %v780_v57  ;;  %v734_v14 = vpack.c.bf16 %v209_v6, %v197_v0  ;;  %v226_v20 = vsub.f32 %v962_v61, %v225_v10  ;;  %v786_v26 = vpack.c.bf16 %v231_v8, %v219_v5  ;;  %v238_v27 = vsub.f32 %v965_v63, %v237_v13 }
  0x1c   :  { %783 = vmatprep.subr.bf16.mxu0 %v782_v2  ;;  %v221_v21 = vand.u32 4294901760, %v220_v12  ;;  %v736_v29 = vpack.c.bf16 %v215_v11, %v203_v7  ;;  %v233_v30 = vand.u32 4294901760, %v232_v19  ;;  %v788_v34 = vpack.c.bf16 %v237_v13, %v225_v10 }
  0x1d   :  { %733 = vmatpush1.bf16.msra.mxu1 %v732_v56  ;;  %v227_v31 = vand.u32 4294901760, %v226_v20  ;;  %v239_v32 = vand.u32 4294901760, %v238_v27  ;;  %v742_v39 = vpack.c.bf16 %v883_v18, %v881_v17  ;;  %v744_v40 = vpack.c.bf16 %v898_v24, %v896_v23 }
  0x1e   :  { %735 = vmatprep.subr.bf16.mxu1 %v734_v14  ;;  %v738_v33 = vpack.c.bf16 %v233_v30, %v221_v21  ;;  %v746_v41 = vpack.c.bf16 %v915_v36, %v910_v28  ;;  %v750_v17 = vpack.c.bf16 %v934_v45, %v932_v44  ;;  %v752_v18 = vpack.c.bf16 %v943_v49, %v941_v48  ;;  %v37_v28 = vld [vmem:[%s1053_s2] sm:$0x3] }
  0x1f   :  { %785 = vmatpush1.bf16.msra.mxu0 %v784_v15  ;;  %v740_v35 = vpack.c.bf16 %v239_v32, %v227_v31  ;;  %v39_v23 = vlaneseq  ;;  %v700_v48 = vld [vmem:[%s1054_s3] sm:$0xff] }
  0x20   :  { %787 = vmatprep.subr.bf16.mxu0 %v786_v26 }
  0x21   :  { %737 = vmatpush1.bf16.msra.mxu1 %v736_v29  ;;  %v40_v24 = vshrl.u32 %v39_v23, 7 }
  0x22   :  { %739 = vmatprep.subr.bf16.mxu1 %v738_v33 }
  0x23   :  { %789 = vmatpush1.bf16.msra.mxu0 %v788_v34  ;;  %v45_v36 = vsub.s32 1, %v40_v24 }
  0x24   :  { %791 = vmatprep.subr.bf16.mxu0 %v879_v16  ;;  %v748_v16 = vpack.c.bf16 %v928_v42, %v920_v38 }
  0x25   :  { %741 = vmatpush1.bf16.msra.mxu1 %v740_v35  ;;  %v46_v42 = vrot.slane %v37_v28, %v45_v36 }
  0x26   :  { %743 = vmatprep.subr.bf16.mxu1 %v742_v39  ;;  %606 = vmatmul.mubr.f32.vlgmr.msra.gmra.mrb[0].mxu0 %v968_v1 }
  0x27   :  { %793 = vmatpush1.bf16.msra.mxu0 %v894_v22  ;;  %692 = vmatprep.mubr.f32.mxu0 %v819_v3  ;;  %v754_v22 = vpack.c.bf16 %v958_v59, %v949_v51  ;;  %v702_v51 = vld [vmem:[%s1055_s4] sm:$0xff] }
  0x28   :  { %291 = vmatmul.mubr.f32.vlgmr.msra.gmra.mrb[0].mxu1 %v968_v1  ;;  %795 = vmatprep.subr.bf16.mxu0 %v900_v25  ;;  %v41_v25 = vsub.s32 0, %v40_v24 }
  0x29   :  { %745 = vmatpush1.bf16.msra.mxu1 %v744_v40  ;;  %393 = vmatprep.mubr.f32.mxu1 %v819_v3  ;;  %v756_v3 = vpack.c.bf16 %v965_v63, %v962_v61 }
  0x2a   :  { %747 = vmatprep.subr.bf16.mxu1 %v746_v41 }
  0x2b   :  { %797 = vmatpush1.bf16.msra.mxu0 %v918_v37  ;;  %v42_v37 = vrot.slane %v37_v28, %v41_v25 }
  0x2c   :  { %799 = vmatprep.subr.bf16.mxu0 %v930_v43 }
  0x2d   :  { %749 = vmatpush1.bf16.msra.mxu1 %v748_v16 }
  0x2e   :  { %751 = vmatprep.subr.bf16.mxu1 %v750_v17 }
  0x2f   :  { %801 = vmatpush1.bf16.msra.mxu0 %v939_v47 }
  0x30   :  { %803 = vmatprep.subr.bf16.mxu0 %v945_v50 }
  0x31   :  { %753 = vmatpush1.bf16.msra.mxu1 %v752_v18 }
  0x32   :  { %755 = vmatprep.subr.bf16.mxu1 %v754_v22 }
  0x33   :  { %805 = vmatpush1.bf16.msra.mxu0 %v960_v60 }
  0x35   :  { %757 = vmatpush1.bf16.msra.mxu1 %v756_v3 }
  0x36   :  { %694 = vmatmul.mubr.f32.vlgmr.msra.gmra.mrb[0].mxu0 %v968_v1 }
  0x38   :  { %396 = vmatmul.mubr.f32.vlgmr.msra.gmra.mrb[0].mxu1 %v978_v9 }
 0x109   :  { %v695_v38 = vpop.f32.mrb[0].mxu0 }
 0x10a   :  { %v697_v43 = vpop.f32.mrb[1].mxu0 }
 0x10b   :  { %v397_v44 = vpop.f32.mrb[0].mxu1 }
 0x10c   :  { %v806_v45 = vadd.f32 %v397_v44, %v42_v37  ;;  %v399_v47 = vpop.f32.mrb[1].mxu1 }
 0x10d   :  { %v808_v49 = vadd.f32 %v399_v47, %v46_v42 }
 0x10e   :  { %v807_v50 = vadd.f32 %v806_v45, %v695_v38 }
 0x10f   :  { %v809_v59 = vadd.f32 %v808_v49, %v697_v43 }
 0x110   :  { %v701_v60 = vmul.f32 %v807_v50, %v700_v48 }
 0x111   :  { %v703_v61 = vmul.f32 %v809_v59, %v702_v51 }
 0x113   :  { %v704_v63 = vadd.f32 %v703_v61, %v701_v60 }
 0x115   :  { %705 = vst [vmem:[%s1056_s5] sm:$0xff] %v704_v63 }

// kernel: qwen2_attention.3
= control target key start
LH: loop header
LB: loop body
LE: loop exit
PB: predicated region body
PF: predicated region fallthrough
CT: control target
= control target key end

     0   :  { %vm30_vm0 = vcmask 130048   ;;  %s6512_s16 = smov 112   ;;  %v6513_v2 = vmov 0.0   ;;  %s7066_s0 = inlined_call_operand.vmem [shape: f32[8,128], index: 0, kind: input, shape index: {}, may-alias: {0,1}]   ;;  %s7067_s1 = inlined_call_operand.vmem [shape: f32[8,128], index: 1, kind: input, shape index: {}, may-alias: {0,1}]   ;;  %s7068_s2 = inlined_call_operand.vmem [shape: f32[4,16,64], index: 2, kind: input, shape index: {}]   ;;  %s7069_s3 = inlined_call_operand.hbm [shape: f32[8,64], index: 3, kind: output, shape index: {}]  }
   0x1   :  { %v6546_v0 = vld [vmem:[%s7067_s1] sm:$0xff]  ;;  %31 = vst.msk [vmem:[#allocation4] sm:$0xff] %vm30_vm0, %v6513_v2  ;;  %32 = vst.msk [vmem:[#allocation4 + $0x8] sm:$0xff] %vm30_vm0, %v6513_v2 }
   0x2   :  { %v40_v1 = vld [vmem:[%s7066_s0] sm:$0xff]  ;;  %50 = vrot.lane.b32.xlu0 %v6546_v0, %s6512_s16  ;;  %33 = vst.msk [vmem:[#allocation4 + $0x10] sm:$0xff] %vm30_vm0, %v6513_v2  ;;  %34 = vst.msk [vmem:[#allocation4 + $0x18] sm:$0xff] %vm30_vm0, %v6513_v2 }
   0x3   :  { %43 = vrot.lane.b32.xlu1 %v40_v1, %s6512_s16 }
   0x4   :  { %8 = vsyncpa [#allocation6], 0  ;;  %5891 = vmatprep.subr.mxu0 %v6513_v2  ;;  %5921 = vmatprep.subr.mxu1 %v6513_v2  ;;  %vm6514_vm1 = vmmov 0   ;;  %s6515_s0 = smov 64   ;;  %s6516_s1 = smov 96   ;;  %v64_v3 = vsel %vm30_vm0, %v40_v1, 0  ;;  %v52_v45 = vlaneseq }
   0x5   :  { %5893 = vmatprep.mubr.msk.f32.mxu0 %vm6514_vm1, %v6513_v2  ;;  %5923 = vmatprep.mubr.msk.f32.mxu1 %vm6514_vm1, %v6513_v2  ;;  %s6517_s17 = smov 80   ;;  %v6568_v4 = vand.u32 4294901760, %v64_v3  ;;  %vm1872_vm3 = vcmask 64512   ;;  %vm21_vm4 = vcmask 7168   ;;  %v6518_v56 = vmov -inf   ;;  %s6520_s18 = smov 32  }
   0x6   :  { %61 = vrot.lane.b32.xlu0 %v6546_v0, %s6515_s0  ;;  %v53_v46 = vshrl.u32 %v52_v45, 7  ;;  %v57_v47 = vand.u32 127, %v52_v45  ;;  %22 = vst.msk [vmem:[#allocation2] sm:$0xff] %vm21_vm4, %v6518_v56  ;;  %23 = vst.msk [vmem:[#allocation2 + $0x8] sm:$0xff] %vm21_vm4, %v6518_v56  ;;  %v6519_v57 = vmov 0   ;;  %vm5700_vm5 = vcmask 523264  }
   0x7   :  { %45 = vrot.lane.b32.xlu1 %v40_v1, %s6516_s1  ;;  %v135_v5 = vsub.f32 %v64_v3, %v6568_v4  ;;  %24 = vst.msk [vmem:[#allocation2 + $0x10] sm:$0xff] %vm21_vm4, %v6518_v56  ;;  %25 = vst.msk [vmem:[#allocation2 + $0x18] sm:$0xff] %vm21_vm4, %v6518_v56  ;;  %6463 = vset.pattern.permute.xlu0 %v6519_v57 }
   0x8   :  { %vm60_vm2 = vcmp.le.s32.totalorder %v57_v47, %v53_v46  ;;  %26 = vst.msk [vmem:[#allocation3] sm:$0xff] %vm21_vm4, %v6513_v2  ;;  %27 = vst.msk [vmem:[#allocation3 + $0x8] sm:$0xff] %vm21_vm4, %v6513_v2  ;;  %6462 = vset.pattern.permute.xlu1 %v6519_v57 }
   0x9   :  { %v136_v6 = vand.u32 4294901760, %v135_v5  ;;  %28 = vst.msk [vmem:[#allocation3 + $0x10] sm:$0xff] %vm21_vm4, %v6513_v2  ;;  %29 = vst.msk [vmem:[#allocation3 + $0x18] sm:$0xff] %vm21_vm4, %v6513_v2 }
   0xb   :  { %47 = vrot.lane.b32.xlu1 %v40_v1, %s6517_s17  ;;  %v137_v11 = vsub.f32 %v135_v5, %v136_v6 }
   0xd   :  { %v138_v17 = vand.u32 4294901760, %v137_v11 }
  0x74   :  { %v6571_v7 = vpop.permute.xlu0 %50 }
  0x75   :  { %v44_v8 = vpop.permute.xlu1 %43  ;;  %962 = vrot.lane.b32.xlu0 %v6571_v7, %s6515_s0 }
  0x76   :  { %v514_v9 = vsel %vm30_vm0, %v44_v8, 0 }
  0x77   :  { %v582_v10 = vand.u32 4294901760, %v514_v9 }
  0x78   :  { %v62_v13 = vpop.permute.xlu0 %61 }
  0x79   :  { %v583_v12 = vsub.f32 %v514_v9, %v582_v10  ;;  %v66_v14 = vsel %vm30_vm0, %v62_v13, 0  ;;  %v46_v24 = vpop.permute.xlu1 %45  ;;  %v6704_v13 = vld [vmem:[#allocation2 + $0x10] sm:$0xff] }
  0x7a   :  { %v69_v16 = vand.u32 4294901760, %v66_v14  ;;  %v964_v27 = vsel %vm30_vm0, %v46_v24, 0 }
  0x7b   :  { %v584_v15 = vand.u32 4294901760, %v583_v12  ;;  %v1034_v29 = vand.u32 4294901760, %v964_v27 }
  0x7c   :  { %v146_v18 = vsub.f32 %v66_v14, %v69_v16  ;;  %5892 = vmatpush3.xpose.msra.mxu0 %v69_v16  ;;  %5922 = vmatpush3.xpose.msra.mxu1 %v69_v16 }
  0x7d   :  { %v585_v19 = vsub.f32 %v583_v12, %v584_v15  ;;  %5896 = vmatprep.subr.mxu0 %v6513_v2  ;;  %5926 = vmatprep.subr.mxu1 %v6513_v2  ;;  %v48_v25 = vpop.permute.xlu1 %47  ;;  %v1035_v31 = vsub.f32 %v964_v27, %v1034_v29 }
  0x7e   :  { %v147_v20 = vand.u32 4294901760, %v146_v18  ;;  %v1414_v26 = vsel %vm30_vm0, %v48_v25, 0 }
  0x7f   :  { %v586_v21 = vand.u32 4294901760, %v585_v19  ;;  %5894 = vmatmul.mubr.f32.vlgmr.msra.gmra.mrb[0].mxu0 %v138_v17  ;;  %v1482_v28 = vand.u32 4294901760, %v1414_v26  ;;  %v1036_v33 = vand.u32 4294901760, %v1035_v31 }
  0x80   :  { %v148_v22 = vsub.f32 %v146_v18, %v147_v20  ;;  %5898 = vmatprep.mubr.msk.f32.mxu0 %vm6514_vm1, %v6513_v2 }
  0x81   :  { %5924 = vmatmul.mubr.f32.vlgmr.msra.gmra.mrb[0].mxu1 %v586_v21  ;;  %v1483_v30 = vsub.f32 %v1414_v26, %v1482_v28  ;;  %v1037_v36 = vsub.f32 %v1035_v31, %v1036_v33 }
  0x82   :  { %5928 = vmatprep.mubr.msk.f32.mxu1 %vm6514_vm1, %v6513_v2  ;;  %v149_v23 = vand.u32 4294901760, %v148_v22 }
  0x83   :  { %v1484_v32 = vand.u32 4294901760, %v1483_v30  ;;  %v1038_v41 = vand.u32 4294901760, %v1037_v36 }
  0x84   :  { %5897 = vmatpush3.xpose.msra.mxu0 %v149_v23  ;;  %5927 = vmatpush3.xpose.msra.mxu1 %v149_v23 }
  0x85   :  { %5901 = vmatprep.subr.mxu0 %v6513_v2  ;;  %5931 = vmatprep.subr.mxu1 %v6513_v2  ;;  %v1485_v34 = vsub.f32 %v1483_v30, %v1484_v32 }
  0x87   :  { %5899 = vmatmul.mubr.f32.vlgmr.msra.gmra.mrb[0].mxu0 %v6568_v4  ;;  %v1486_v39 = vand.u32 4294901760, %v1485_v34 }
  0x88   :  { %5902 = vmatpush3.xpose.msra.mxu0 %v146_v18  ;;  %5903 = vmatprep.mubr.msk.f32.mxu0 %vm6514_vm1, %v6513_v2 }
  0x89   :  { %5929 = vmatmul.mubr.f32.vlgmr.msra.gmra.mrb[0].mxu1 %v582_v10  ;;  %5906 = vmatprep.subr.mxu0 %v6513_v2 }
  0x8a   :  { %5932 = vmatpush3.xpose.msra.mxu1 %v146_v18  ;;  %5933 = vmatprep.mubr.msk.f32.mxu1 %vm6514_vm1, %v6513_v2 }
  0x8b   :  { %5936 = vmatprep.subr.mxu1 %v6513_v2 }
  0x8f   :  { %5904 = vmatmul.mubr.f32.vlgmr.msra.gmra.mrb[0].mxu0 %v135_v5  ;;  %v6685_v5 = vld [vmem:[#allocation2 + $0x8] sm:$0xff] }
  0x90   :  { %5907 = vmatpush3.xpose.msra.mxu0 %v69_v16  ;;  %5908 = vmatprep.mubr.msk.f32.mxu0 %vm6514_vm1, %v6513_v2 }
  0x91   :  { %5934 = vmatmul.mubr.f32.vlgmr.msra.gmra.mrb[0].mxu1 %v583_v12  ;;  %5911 = vmatprep.subr.mxu0 %v6513_v2 }
  0x92   :  { %5937 = vmatpush3.xpose.msra.mxu1 %v69_v16  ;;  %5938 = vmatprep.mubr.msk.f32.mxu1 %vm6514_vm1, %v6513_v2 }
  0x93   :  { %5941 = vmatprep.subr.mxu1 %v6513_v2 }
  0x97   :  { %5909 = vmatmul.mubr.f32.vlgmr.msra.gmra.mrb[0].mxu0 %v136_v6 }
  0x98   :  { %5912 = vmatpush3.xpose.msra.mxu0 %v147_v20  ;;  %5913 = vmatprep.mubr.msk.f32.mxu0 %vm6514_vm1, %v6513_v2 }
  0x99   :  { %5939 = vmatmul.mubr.f32.vlgmr.msra.gmra.mrb[0].mxu1 %v584_v15  ;;  %5916 = vmatprep.subr.mxu0 %v6513_v2 }
  0x9a   :  { %5942 = vmatpush3.xpose.msra.mxu1 %v147_v20  ;;  %5943 = vmatprep.mubr.msk.f32.mxu1 %vm6514_vm1, %v6513_v2 }
  0x9b   :  { %5946 = vmatprep.subr.mxu1 %v6513_v2 }
  0x9f   :  { %5914 = vmatmul.mubr.f32.vlgmr.msra.gmra.mrb[0].mxu0 %v6568_v4 }
  0xa0   :  { %5917 = vmatpush3.xpose.msra.mxu0 %v69_v16  ;;  %5918 = vmatprep.mubr.msk.f32.mxu0 %vm6514_vm1, %v6513_v2 }
  0xa1   :  { %5944 = vmatmul.mubr.f32.vlgmr.msra.gmra.mrb[0].mxu1 %v582_v10  ;;  %5951 = vmatprep.subr.mxu0 %v6513_v2 }
  0xa2   :  { %5947 = vmatpush3.xpose.msra.mxu1 %v69_v16  ;;  %5948 = vmatprep.mubr.msk.f32.mxu1 %vm6514_vm1, %v6513_v2  ;;  %v6709_v16 = vld [vmem:[#allocation2 + $0x18] sm:$0xff] }
  0xa3   :  { %5981 = vmatprep.subr.mxu1 %v6513_v2 }
  0xa7   :  { %5919 = vmatmul.mubr.f32.vlgmr.msra.gmra.mrb[0].mxu0 %v6568_v4  ;;  %v6683_v4 = vld [vmem:[#allocation2] sm:$0xff] }
  0xa8   :  { %5953 = vmatprep.mubr.msk.f32.mxu0 %vm6514_vm1, %v6513_v2 }
  0xa9   :  { %5949 = vmatmul.mubr.f32.vlgmr.msra.gmra.mrb[0].mxu1 %v582_v10 }
  0xaa   :  { %5983 = vmatprep.mubr.msk.f32.mxu1 %vm6514_vm1, %v6513_v2 }
  0xe7   :  { %v963_v35 = vpop.permute.xlu0 %962 }
  0xe8   :  { %v966_v37 = vsel %vm30_vm0, %v963_v35, 0 }
  0xe9   :  { %v969_v38 = vand.u32 4294901760, %v966_v37 }
  0xeb   :  { %v1046_v40 = vsub.f32 %v966_v37, %v969_v38  ;;  %5952 = vmatpush3.xpose.msra.mxu0 %v969_v38  ;;  %5982 = vmatpush3.xpose.msra.mxu1 %v969_v38 }
  0xec   :  { %5956 = vmatprep.subr.mxu0 %v6513_v2  ;;  %5986 = vmatprep.subr.mxu1 %v6513_v2 }
  0xed   :  { %v1047_v42 = vand.u32 4294901760, %v1046_v40 }
  0xee   :  { %5954 = vmatmul.mubr.f32.vlgmr.msra.gmra.mrb[2].mxu0 %v1038_v41  ;;  %5984 = vmatmul.mubr.f32.vlgmr.msra.gmra.mrb[2].mxu1 %v1486_v39 }
  0xef   :  { %v1048_v43 = vsub.f32 %v1046_v40, %v1047_v42  ;;  %5958 = vmatprep.mubr.msk.f32.mxu0 %vm6514_vm1, %v6513_v2  ;;  %5988 = vmatprep.mubr.msk.f32.mxu1 %vm6514_vm1, %v6513_v2 }
  0xf1   :  { %v1049_v44 = vand.u32 4294901760, %v1048_v43 }
  0xf3   :  { %5957 = vmatpush3.xpose.msra.mxu0 %v1049_v44  ;;  %5987 = vmatpush3.xpose.msra.mxu1 %v1049_v44 }
  0xf4   :  { %5961 = vmatprep.subr.mxu0 %v6513_v2  ;;  %5991 = vmatprep.subr.mxu1 %v6513_v2 }
  0xf6   :  { %5959 = vmatmul.mubr.f32.vlgmr.msra.gmra.mrb[2].mxu0 %v1034_v29  ;;  %5989 = vmatmul.mubr.f32.vlgmr.msra.gmra.mrb[2].mxu1 %v1482_v28 }
  0xf7   :  { %5962 = vmatpush3.xpose.msra.mxu0 %v1046_v40  ;;  %5992 = vmatpush3.xpose.msra.mxu1 %v1046_v40 }
  0xf8   :  { %5963 = vmatprep.mubr.msk.f32.mxu0 %vm6514_vm1, %v6513_v2  ;;  %5966 = vmatprep.subr.mxu0 %v6513_v2 }
  0xf9   :  { %5993 = vmatprep.mubr.msk.f32.mxu1 %vm6514_vm1, %v6513_v2  ;;  %5996 = vmatprep.subr.mxu1 %v6513_v2 }
  0xfe   :  { %5964 = vmatmul.mubr.f32.vlgmr.msra.gmra.mrb[2].mxu0 %v1035_v31  ;;  %5994 = vmatmul.mubr.f32.vlgmr.msra.gmra.mrb[2].mxu1 %v1483_v30 }
  0xff   :  { %5967 = vmatpush3.xpose.msra.mxu0 %v969_v38  ;;  %5997 = vmatpush3.xpose.msra.mxu1 %v969_v38 }
 0x100   :  { %5968 = vmatprep.mubr.msk.f32.mxu0 %vm6514_vm1, %v6513_v2  ;;  %5971 = vmatprep.subr.mxu0 %v6513_v2 }
 0x101   :  { %5998 = vmatprep.mubr.msk.f32.mxu1 %vm6514_vm1, %v6513_v2  ;;  %6001 = vmatprep.subr.mxu1 %v6513_v2 }
 0x106   :  { %5969 = vmatmul.mubr.f32.vlgmr.msra.gmra.mrb[2].mxu0 %v1036_v33  ;;  %5999 = vmatmul.mubr.f32.vlgmr.msra.gmra.mrb[2].mxu1 %v1484_v32 }
 0x107   :  { %5972 = vmatpush3.xpose.msra.mxu0 %v1047_v42  ;;  %6002 = vmatpush3.xpose.msra.mxu1 %v1047_v42 }
 0x108   :  { %5973 = vmatprep.mubr.msk.f32.mxu0 %vm6514_vm1, %v6513_v2  ;;  %5976 = vmatprep.subr.mxu0 %v6513_v2 }
 0x109   :  { %6003 = vmatprep.mubr.msk.f32.mxu1 %vm6514_vm1, %v6513_v2  ;;  %6006 = vmatprep.subr.mxu1 %v6513_v2 }
 0x10e   :  { %5974 = vmatmul.mubr.f32.vlgmr.msra.gmra.mrb[2].mxu0 %v1034_v29  ;;  %6004 = vmatmul.mubr.f32.vlgmr.msra.gmra.mrb[2].mxu1 %v1482_v28 }
 0x10f   :  { %5977 = vmatpush3.xpose.msra.mxu0 %v969_v38  ;;  %6007 = vmatpush3.xpose.msra.mxu1 %v969_v38 }
 0x110   :  { %5978 = vmatprep.mubr.msk.f32.mxu0 %vm6514_vm1, %v6513_v2  ;;  %6008 = vmatprep.mubr.msk.f32.mxu1 %vm6514_vm1, %v6513_v2 }
 0x111   :  { %6016 = vmatprep.subr.mxu1 %v6513_v2  ;;  %6011 = vmatprep.subr.mxu0 %v6513_v2 }
 0x116   :  { %5979 = vmatmul.mubr.f32.vlgmr.msra.gmra.mrb[2].mxu0 %v1034_v29  ;;  %6009 = vmatmul.mubr.f32.vlgmr.msra.gmra.mrb[2].mxu1 %v1482_v28 }
 0x117   :  { %6018 = vmatprep.mubr.msk.f32.mxu1 %vm6514_vm1, %v6513_v2  ;;  %6013 = vmatprep.mubr.msk.f32.mxu0 %vm6514_vm1, %v6513_v2 }
 0x17a   :  { %v510_v48 = vpop.f32.mrb[0].mxu0 }
 0x17b   :  { %v6655_v49 = vsel %vm60_vm2, %v510_v48, -1e+30  ;;  %v5920_v51 = vpop.f32.mrb[1].mxu0 }
 0x17c   :  { %v958_v50 = vpop.f32.mrb[0].mxu1  ;;  %v1873_v53 = vsel %vm1872_vm3, %v6655_v49, -inf }
 0x17d   :  { %v1865_v52 = vsel %vm60_vm2, %v958_v50, -1e+30  ;;  %v5950_v54 = vpop.f32.mrb[1].mxu1  ;;  %1874 = vmax.xlane.f32.xlu0 %v1873_v53 }
 0x17e   :  { %v1876_v55 = vsel %vm1872_vm3, %v1865_v52, -inf }
 0x17f   :  { %1877 = vmax.xlane.f32.xlu1 %v1876_v55 }
 0x1e9   :  { %v1410_v58 = vpop.f32.mrb[2].mxu0  ;;  %v1858_v59 = vpop.f32.mrb[2].mxu1 }
 0x1ea   :  { %v6674_v60 = vsel %vm60_vm2, %v1410_v58, -1e+30  ;;  %v5980_v61 = vpop.f32.mrb[3].mxu0  ;;  %v6010_v62 = vpop.f32.mrb[3].mxu1  ;;  %v6679_v1 = vsel %vm60_vm2, %v1858_v59, -1e+30 }
 0x1eb   :  { %v1879_v63 = vsel %vm1872_vm3, %v6674_v60, -inf  ;;  %v1882_v3 = vsel %vm1872_vm3, %v6679_v1, -inf }
 0x1ec   :  { %1880 = vmax.xlane.f32.xlu0 %v1879_v63 }
 0x1f0   :  { %1883 = vmax.xlane.f32.xlu0 %v1882_v3 }
 0x20a   :  { %v1875_v6 = vpop.xlane.xlu0 %1874 }
 0x20b   :  { %v6688_v8 = vmax.f32 %v6683_v4, %v1875_v6 }
 0x20c   :  { %v1878_v9 = vpop.xlane.xlu1 %1877 }
 0x20d   :  { %v6691_v10 = vmax.f32 %v6685_v5, %v1878_v9  ;;  %v1889_v11 = vsub.f32 %v6683_v4, %v6688_v8  ;;  %3800 = vst.msk [vmem:[#allocation2] sm:$0xff] %vm21_vm4, %v6688_v8  ;;  %1903 = vperm.xlu1 %6462, %v6688_v8  }
 0x20f   :  { %v1890_v12 = vsub.f32 %v6685_v5, %v6691_v10  ;;  %3801 = vst.msk [vmem:[#allocation2 + $0x8] sm:$0xff] %vm21_vm4, %v6691_v10  ;;  %1908 = vperm.xlu0 %6463, %v6691_v10   ;;  %v1893_v45 = vmul.f32 1.442695, %v1889_v11 }
 0x211   :  { %1990 = vrot.lane.b32.xlu1 %v6546_v0, %s6520_s18 }
 0x279   :  { %v1881_v14 = vpop.xlane.xlu0 %1880 }
 0x27a   :  { %v6707_v15 = vmax.f32 %v6704_v13, %v1881_v14  ;;  %v1895_v14 = vmul.f32 1.442695, %v1890_v12 }
 0x27c   :  { %v1891_v17 = vsub.f32 %v6704_v13, %v6707_v15  ;;  %3802 = vst.msk [vmem:[#allocation2 + $0x10] sm:$0xff] %vm21_vm4, %v6707_v15  ;;  %1913 = vperm.xlu1 %6462, %v6707_v15   ;;  %v3845_v15 = vld [vmem:[%s7068_s2 + $0x10] sm:$0xff] }
 0x27d   :  { %v1884_v18 = vpop.xlane.xlu0 %1883 }
 0x27e   :  { %v6717_v19 = vmax.f32 %v6709_v16, %v1884_v18 }
 0x280   :  { %v1892_v0 = vsub.f32 %v6709_v16, %v6717_v19  ;;  %3803 = vst.msk [vmem:[#allocation2 + $0x18] sm:$0xff] %vm21_vm4, %v6717_v19  ;;  %1918 = vperm.xlu1 %6462, %v6717_v19   ;;  %v4318_v16 = vand.u32 4294901760, %v3845_v15 }
 0x284   :  { %2891 = vrot.lane.b32.xlu1 %v6571_v7, %s6520_s18 }
 0x28c   :  { %v1904_v20 = vpop.permute.xlu1 %1903 }
 0x28d   :  { %v1921_v21 = vsub.f32 %v6655_v49, %v1904_v20 }
 0x28e   :  { %v1909_v22 = vpop.permute.xlu0 %1908 }
 0x28f   :  { %v1922_v23 = vsub.f32 %v1865_v52, %v1909_v22  ;;  %v1925_v24 = vmul.f32 1.442695, %v1921_v21 }
 0x290   :  { %v1991_v26 = vpop.permute.xlu1 %1990 }
 0x291   :  { %v1927_v25 = vmul.f32 1.442695, %v1922_v23  ;;  %6464 = vpow2.f32 %v1925_v24  ;;  %v1997_v27 = vand.u32 4294901760, %v1991_v26  ;;  %v1934_v23 = vld [vmem:[#allocation3 + $0x8] sm:$0xff] }
 0x293   :  { %6466 = vpow2.f32 %v1927_v25  ;;  %v2074_v28 = vsub.f32 %v1991_v26, %v1997_v27  ;;  %6012 = vmatpush3.msra.mxu0 %v1997_v27 }
 0x294   :  { %6021 = vmatprep.subr.mxu0 %v6513_v2  ;;  %6468 = vpow2.f32 %v1893_v45 }
 0x295   :  { %v6727_v29 = vand.u32 4294901760, %v2074_v28 }
 0x297   :  { %v2076_v30 = vsub.f32 %v2074_v28, %v6727_v29 }
 0x299   :  { %v2077_v7 = vand.u32 4294901760, %v2076_v30 }
 0x29b   :  { %v6465_v31 = vpop.eup %6464  ;;  %6017 = vmatpush3.msra.mxu1 %v2077_v7 }
 0x29c   :  { %v1994_v33 = vsel %vm1872_vm3, %v6465_v31, 0  ;;  %6026 = vmatprep.subr.mxu1 %v6513_v2  ;;  %v1941_v43 = vsel %vm1872_vm3, %v6465_v31, 0.0 }
 0x29d   :  { %v6467_v32 = vpop.eup %6466  ;;  %v2062_v35 = vand.u32 4294901760, %v1994_v33 }
 0x29e   :  { %v1944_v34 = vsel %vm1872_vm3, %v6467_v32, 0.0  ;;  %v2443_v36 = vsel %vm1872_vm3, %v6467_v32, 0  ;;  %v6768_v48 = vpop.eup %6468  ;;  %v1899_v32 = vmul.f32 1.442695, %v1892_v0 }
 0x29f   :  { %1945 = vadd.xlane.f32.xlu0 %v1944_v34  ;;  %v2063_v37 = vsub.f32 %v1994_v33, %v2062_v35  ;;  %6019 = vmatmul.mubr.f32.vlgmr.msra.gmra.mrb[4].mxu1 %v2062_v35  ;;  %v2511_v39 = vand.u32 4294901760, %v2443_v36 }
 0x2a0   :  { %6027 = vmatpush3.msra.mxu1 %v1997_v27  ;;  %6028 = vmatprep.mubr.msk.f32.mxu1 %vm6514_vm1, %v6513_v2 }
 0x2a1   :  { %v2064_v38 = vand.u32 4294901760, %v2063_v37  ;;  %6036 = vmatprep.subr.mxu1 %v6513_v2  ;;  %v2512_v42 = vsub.f32 %v2443_v36, %v2511_v39 }
 0x2a3   :  { %6029 = vmatmul.mubr.f32.vlgmr.msra.gmra.mrb[6].mxu1 %v2064_v38  ;;  %v2065_v40 = vsub.f32 %v2063_v37, %v2064_v38  ;;  %v2513_v44 = vand.u32 4294901760, %v2512_v42 }
 0x2a4   :  { %6037 = vmatpush3.msra.mxu1 %v1997_v27  ;;  %6038 = vmatprep.mubr.msk.f32.mxu1 %vm6514_vm1, %v6513_v2 }
 0x2a5   :  { %v2066_v41 = vand.u32 4294901760, %v2065_v40  ;;  %6046 = vmatprep.subr.mxu1 %v6513_v2  ;;  %v2514_v46 = vsub.f32 %v2512_v42, %v2513_v44 }
 0x2a7   :  { %6014 = vmatmul.mubr.f32.vlgmr.msra.gmra.mrb[4].mxu0 %v2066_v41  ;;  %6039 = vmatmul.mubr.f32.vlgmr.msra.gmra.mrb[8].mxu1 %v2062_v35  ;;  %v2515_v47 = vand.u32 4294901760, %v2514_v46 }
 0x2a8   :  { %1942 = vadd.xlane.f32.xlu1 %v1941_v43  ;;  %6022 = vmatpush3.msra.mxu0 %v2074_v28  ;;  %v3844_v43 = vld [vmem:[%s7068_s2 + $0x8] sm:$0xff] }
 0x2a9   :  { %6023 = vmatprep.mubr.msk.f32.mxu0 %vm6514_vm1, %v6513_v2  ;;  %6047 = vmatpush3.msra.mxu1 %v2077_v7 }
 0x2aa   :  { %6048 = vmatprep.mubr.msk.f32.mxu1 %vm6514_vm1, %v6513_v2  ;;  %6031 = vmatprep.subr.mxu0 %v6513_v2 }
 0x2ab   :  { %6024 = vmatmul.mubr.f32.vlgmr.msra.gmra.mrb[6].mxu0 %v2063_v37  ;;  %6049 = vmatmul.mubr.f32.vlgmr.msra.gmra.mrb[10].mxu1 %v2511_v39  ;;  %v6521_v37 = vmov 0.0|0.0  }
 0x2ac   :  { %6056 = vmatprep.subr.mxu1 %v6513_v2  ;;  %6032 = vmatpush3.msra.mxu0 %v6727_v29 }
 0x2ad   :  { %6033 = vmatprep.mubr.msk.f32.mxu0 %vm6514_vm1, %v6513_v2  ;;  %6057 = vmatpush3.msra.mxu1 %v1997_v27 }
 0x2ae   :  { %6058 = vmatprep.mubr.msk.f32.mxu1 %vm6514_vm1, %v6513_v2  ;;  %6041 = vmatprep.subr.mxu0 %v6513_v2 }
 0x2af   :  { %6034 = vmatmul.mubr.f32.vlgmr.msra.gmra.mrb[8].mxu0 %v2062_v35  ;;  %6059 = vmatmul.mubr.f32.vlgmr.msra.gmra.mrb[12].mxu1 %v2513_v44  ;;  %v6848_v35 = vsub.f32 %v3845_v15, %v4318_v16 }
 0x2b0   :  { %6066 = vmatprep.subr.mxu1 %v6513_v2  ;;  %6042 = vmatpush3.msra.mxu0 %v1997_v27 }
 0x2b1   :  { %6043 = vmatprep.mubr.msk.f32.mxu0 %vm6514_vm1, %v6513_v2  ;;  %6067 = vmatpush3.msra.mxu1 %v1997_v27  ;;  %v1933_v27 = vld [vmem:[#allocation3] sm:$0xff]  ;;  %v4397_v38 = vand.u32 4294901760, %v6848_v35 }
 0x2b2   :  { %6068 = vmatprep.mubr.msk.f32.mxu1 %vm6514_vm1, %v6513_v2  ;;  %6051 = vmatprep.subr.mxu0 %v6513_v2 }
 0x2b3   :  { %6044 = vmatmul.mubr.f32.vlgmr.msra.gmra.mrb[10].mxu0 %v2515_v47  ;;  %6069 = vmatmul.mubr.f32.vlgmr.msra.gmra.mrb[14].mxu1 %v2511_v39  ;;  %v4398_v40 = vsub.f32 %v6848_v35, %v4397_v38  ;;  %v3859_v47 = vand.u32 4294901760, %v3844_v43 }
 0x2b4   :  { %6052 = vmatpush3.msra.mxu0 %v2074_v28  ;;  %6053 = vmatprep.mubr.msk.f32.mxu0 %vm6514_vm1, %v6513_v2  ;;  %v1937_v28 = vmul.f32 %v6768_v48, %v1933_v27 }
 0x2b5   :  { %6061 = vmatprep.subr.mxu0 %v6513_v2  ;;  %6076 = vmatprep.subr.mxu1 %v6513_v2  ;;  %v4399_v44 = vand.u32 4294901760, %v4398_v40 }
 0x2b6   :  { %6078 = vmatprep.mubr.msk.f32.mxu1 %vm6514_vm1, %v6513_v2 }
 0x2b7   :  { %6054 = vmatmul.mubr.f32.vlgmr.msra.gmra.mrb[12].mxu0 %v2512_v42  ;;  %v3843_v42 = vld [vmem:[%s7068_s2] sm:$0xff] }
 0x2b8   :  { %6062 = vmatpush3.msra.mxu0 %v6727_v29  ;;  %6063 = vmatprep.mubr.msk.f32.mxu0 %vm6514_vm1, %v6513_v2  ;;  %v1897_v29 = vmul.f32 1.442695, %v1891_v17  ;;  %v3846_v17 = vld [vmem:[%s7068_s2 + $0x18] sm:$0xff]  ;;  %v3856_v46 = vand.u32 4294901760, %v3843_v42 }
 0x2b9   :  { %1968 = vperm.xlu1 %6462, %v6768_v48   ;;  %6071 = vmatprep.subr.mxu0 %v6513_v2  ;;  %v4321_v19 = vand.u32 4294901760, %v3846_v17 }
 0x2bb   :  { %6064 = vmatmul.mubr.f32.vlgmr.msra.gmra.mrb[14].mxu0 %v2511_v39  ;;  %v6846_v0 = vpack.c.bf16 %v4321_v19, %v4318_v16  ;;  %v6850_v36 = vsub.f32 %v3846_v17, %v4321_v19 }
 0x2bc   :  { %6073 = vmatprep.mubr.msk.f32.mxu0 %vm6514_vm1, %v6513_v2 }
 0x2bd   :  { %v4404_v39 = vand.u32 4294901760, %v6850_v36 }
 0x2bf   :  { %v4405_v41 = vsub.f32 %v6850_v36, %v4404_v39 }
 0x2c1   :  { %v4406_v45 = vand.u32 4294901760, %v4405_v41 }
 0x2c3   :  { %v6866_v48 = vpack.c.bf16 %v4406_v45, %v4399_v44  ;;  %v1935_v44 = vld [vmem:[#allocation3 + $0x10] sm:$0xff] }
 0x2fb   :  { %v1914_v49 = vpop.permute.xlu1 %1913 }
 0x2fc   :  { %v1923_v50 = vsub.f32 %v6674_v60, %v1914_v49  ;;  %v6868_v49 = vpack.c.bf16 %v3859_v47, %v3856_v46 }
 0x2fe   :  { %v1929_v51 = vmul.f32 1.442695, %v1923_v50  ;;  %v6870_v50 = vsub.f32 %v3843_v42, %v3856_v46 }
 0x2ff   :  { %v1919_v52 = vpop.permute.xlu1 %1918 }
 0x300   :  { %6470 = vpow2.f32 %v1929_v51  ;;  %v1924_v53 = vsub.f32 %v6679_v1, %v1919_v52  ;;  %v6872_v51 = vsub.f32 %v3844_v43, %v3859_v47  ;;  %v3935_v52 = vand.u32 4294901760, %v6870_v50  ;;  %v1936_v47 = vld [vmem:[#allocation3 + $0x18] sm:$0xff] }
 0x302   :  { %v1931_v54 = vmul.f32 1.442695, %v1924_v53  ;;  %v3942_v53 = vand.u32 4294901760, %v6872_v51 }
 0x303   :  { %v2892_v55 = vpop.permute.xlu1 %2891 }
 0x304   :  { %6472 = vpow2.f32 %v1931_v54  ;;  %v2898_v56 = vand.u32 4294901760, %v2892_v55  ;;  %v6324_v54 = vpack.c.bf16 %v6850_v36, %v6848_v35 }
 0x305   :  { %6474 = vpow2.f32 %v1895_v14 }
 0x306   :  { %v2975_v57 = vsub.f32 %v2892_v55, %v2898_v56  ;;  %6072 = vmatpush3.msra.mxu0 %v2898_v56  ;;  %6476 = vpow2.f32 %v1897_v29  ;;  %v3936_v55 = vsub.f32 %v6870_v50, %v3935_v52 }
 0x307   :  { %6081 = vmatprep.subr.mxu0 %v6513_v2  ;;  %6478 = vpow2.f32 %v1899_v32 }
 0x308   :  { %v6780_v58 = vand.u32 4294901760, %v2975_v57 }
 0x30a   :  { %v6471_v59 = vpop.eup %6470  ;;  %v2977_v61 = vsub.f32 %v2975_v57, %v6780_v58 }
 0x30b   :  { %v1947_v60 = vsel %vm1872_vm3, %v6471_v59, 0.0  ;;  %v2895_v62 = vsel %vm1872_vm3, %v6471_v59, 0 }
 0x30c   :  { %1948 = vadd.xlane.f32.xlu1 %v1947_v60  ;;  %v2978_v63 = vand.u32 4294901760, %v2977_v61  ;;  %v2963_v1 = vand.u32 4294901760, %v2895_v62  ;;  %v6306_v61 = vpack.c.bf16 %v6872_v51, %v6870_v50  ;;  %v6886_v60 = vpack.c.bf16 %v4404_v39, %v4397_v38 }
 0x30e   :  { %v6473_v3 = vpop.eup %6472  ;;  %6077 = vmatpush3.msra.mxu1 %v2978_v63  ;;  %v2964_v4 = vsub.f32 %v2895_v62, %v2963_v1 }
 0x30f   :  { %6079 = vmatmul.mubr.f32.vlgmr.msra.gmra.mrb[16].mxu1 %v2963_v1  ;;  %6086 = vmatprep.subr.mxu1 %v6513_v2  ;;  %v1950_v6 = vsel %vm1872_vm3, %v6473_v3, 0.0  ;;  %v3344_v8 = vsel %vm1872_vm3, %v6473_v3, 0  ;;  %v6475_v12 = vpop.eup %6474 }
 0x310   :  { %6087 = vmatpush3.msra.mxu1 %v2898_v56  ;;  %1951 = vadd.xlane.f32.xlu1 %v1950_v6  ;;  %v2965_v9 = vand.u32 4294901760, %v2964_v4  ;;  %v3412_v11 = vand.u32 4294901760, %v3344_v8  ;;  %v1938_v24 = vmul.f32 %v6475_v12, %v1934_v23  ;;  %v6834_v34 = vpop.eup %6476  ;;  %v1962_v23 = vld [vmem:[#allocation4] sm:$0xff] }
 0x311   :  { %6088 = vmatprep.mubr.msk.f32.mxu1 %vm6514_vm1, %v6513_v2  ;;  %6096 = vmatprep.subr.mxu1 %v6513_v2  ;;  %v6837_v13 = vpop.eup %6478  ;;  %v1939_v45 = vmul.f32 %v6834_v34, %v1935_v44 }
 0x312   :  { %v2966_v18 = vsub.f32 %v2964_v4, %v2965_v9  ;;  %v3413_v21 = vsub.f32 %v3344_v8, %v3412_v11 }
 0x313   :  { %6089 = vmatmul.mubr.f32.vlgmr.msra.gmra.mrb[18].mxu1 %v2965_v9 }
 0x314   :  { %6097 = vmatpush3.msra.mxu1 %v2898_v56  ;;  %v2967_v20 = vand.u32 4294901760, %v2966_v18  ;;  %6098 = vmatprep.mubr.msk.f32.mxu1 %vm6514_vm1, %v6513_v2  ;;  %v3414_v5 = vand.u32 4294901760, %v3413_v21 }
 0x315   :  { %6106 = vmatprep.subr.mxu1 %v6513_v2 }
 0x316   :  { %6074 = vmatmul.mubr.f32.vlgmr.msra.gmra.mrb[16].mxu0 %v2967_v20  ;;  %v3415_v10 = vsub.f32 %v3413_v21, %v3414_v5 }
 0x317   :  { %6082 = vmatpush3.msra.mxu0 %v2975_v57  ;;  %6099 = vmatmul.mubr.f32.vlgmr.msra.gmra.mrb[20].mxu1 %v2963_v1 }
 0x318   :  { %6107 = vmatpush3.msra.mxu1 %v2978_v63  ;;  %6083 = vmatprep.mubr.msk.f32.mxu0 %vm6514_vm1, %v6513_v2  ;;  %v3416_v22 = vand.u32 4294901760, %v3415_v10 }
 0x319   :  { %6091 = vmatprep.subr.mxu0 %v6513_v2  ;;  %6108 = vmatprep.mubr.msk.f32.mxu1 %vm6514_vm1, %v6513_v2 }
 0x31a   :  { %6084 = vmatmul.mubr.f32.vlgmr.msra.gmra.mrb[18].mxu0 %v2964_v4  ;;  %6116 = vmatprep.subr.mxu1 %v6513_v2 }
 0x31b   :  { %6092 = vmatpush3.msra.mxu0 %v6780_v58  ;;  %6109 = vmatmul.mubr.f32.vlgmr.msra.gmra.mrb[22].mxu1 %v3412_v11 }
 0x31c   :  { %6117 = vmatpush3.msra.mxu1 %v2898_v56  ;;  %6093 = vmatprep.mubr.msk.f32.mxu0 %vm6514_vm1, %v6513_v2 }
 0x31d   :  { %6101 = vmatprep.subr.mxu0 %v6513_v2  ;;  %6118 = vmatprep.mubr.msk.f32.mxu1 %vm6514_vm1, %v6513_v2 }
 0x31e   :  { %6094 = vmatmul.mubr.f32.vlgmr.msra.gmra.mrb[20].mxu0 %v2963_v1  ;;  %6126 = vmatprep.subr.mxu1 %v6513_v2  ;;  %v6888_v1 = vpack.c.bf16 %v3942_v53, %v3935_v52 }
 0x31f   :  { %6102 = vmatpush3.msra.mxu0 %v2898_v56  ;;  %6119 = vmatmul.mubr.f32.vlgmr.msra.gmra.mrb[24].mxu1 %v3414_v5 }
 0x320   :  { %6127 = vmatpush3.msra.mxu1 %v2898_v56  ;;  %6103 = vmatprep.mubr.msk.f32.mxu0 %vm6514_vm1, %v6513_v2  ;;  %v3943_v56 = vsub.f32 %v6872_v51, %v3942_v53  ;;  %v1940_v53 = vmul.f32 %v6837_v13, %v1936_v47 }
 0x321   :  { %6111 = vmatprep.subr.mxu0 %v6513_v2  ;;  %1973 = vperm.xlu1 %6462, %v6475_v12  }
 0x322   :  { %6104 = vmatmul.mubr.f32.vlgmr.msra.gmra.mrb[22].mxu0 %v3416_v22  ;;  %6128 = vmatprep.mubr.msk.f32.mxu1 %vm6514_vm1, %v6513_v2 }
 0x323   :  { %6112 = vmatpush3.msra.mxu0 %v2975_v57  ;;  %6129 = vmatmul.mubr.f32.vlgmr.msra.gmra.mrb[26].mxu1 %v3412_v11  ;;  %v3937_v57 = vand.u32 4294901760, %v3936_v55 }
 0x324   :  { %6113 = vmatprep.mubr.msk.f32.mxu0 %vm6514_vm1, %v6513_v2  ;;  %6121 = vmatprep.subr.mxu0 %v6513_v2 }
 0x325   :  { %6177 = vmatprep.mubr.msk.f32.mxu1 %vm6514_vm1, %v6513_v2  ;;  %6317 = vmatprep.subr.bf16.mxu1 %v6521_v37 }
 0x326   :  { %6114 = vmatmul.mubr.f32.vlgmr.msra.gmra.mrb[24].mxu0 %v3413_v21  ;;  %6319 = vmatpush3.bf16.msra.mxu1 %v6846_v0 }
 0x327   :  { %6122 = vmatpush3.msra.mxu0 %v6780_v58  ;;  %6123 = vmatprep.mubr.msk.f32.mxu0 %vm6514_vm1, %v6513_v2  ;;  %v3944_v58 = vand.u32 4294901760, %v3943_v56 }
 0x328   :  { %6299 = vmatprep.subr.bf16.mxu0 %v6521_v37  ;;  %6320 = vmatprep.subr.bf16.mxu1 %v6521_v37 }
 0x329   :  { %v6882_v59 = vpack.c.bf16 %v3944_v58, %v3937_v57  ;;  %v1963_v57 = vld [vmem:[#allocation4 + $0x8] sm:$0xff] }
 0x32a   :  { %6124 = vmatmul.mubr.f32.vlgmr.msra.gmra.mrb[26].mxu0 %v3412_v11 }
 0x32b   :  { %6135 = vmatprep.mubr.msk.f32.mxu0 %vm6514_vm1, %v6513_v2  ;;  %6301 = vmatpush3.bf16.msra.mxu0 %v6868_v49 }
 0x32c   :  { %v1946_v25 = vpop.xlane.xlu0 %1945  ;;  %6302 = vmatprep.subr.bf16.mxu0 %v6521_v37 }
 0x32d   :  { %v1954_v26 = vadd.f32 %v1946_v25, %v1938_v24 }
 0x32f   :  { %1959 = vst.msk [vmem:[#allocation3 + $0x8] sm:$0xff] %vm21_vm4, %v1954_v26 }
 0x335   :  { %v1943_v30 = vpop.xlane.xlu1 %1942 }
 0x336   :  { %v3812_v7 = vld [vmem:[#allocation3 + $0x8] sm:$0xff]  ;;  %v1953_v31 = vadd.f32 %v1943_v30, %v1937_v28 }
 0x337   :  { %3822 = vperm.xlu1 %6462, %v3812_v7  }
 0x338   :  { %1958 = vst.msk [vmem:[#allocation3] sm:$0xff] %vm21_vm4, %v1953_v31 }
 0x339   :  { %v1969_v12 = vpop.permute.xlu1 %1968 }
 0x33a   :  { %v1986_v29 = vmul.f32 %v1969_v12, %v1962_v23 }
 0x33f   :  { %v3811_v33 = vld [vmem:[#allocation3] sm:$0xff] }
 0x340   :  { %3817 = vperm.xlu0 %6463, %v3811_v33  }
 0x344   :  { %1978 = vperm.xlu0 %6463, %v6834_v34  }
 0x348   :  { %1983 = vperm.xlu0 %6463, %v6837_v13   ;;  %v6899_v13 = vld [vmem:[%s7068_s2 + $0x30] sm:$0xff] }
 0x372   :  { %v2144_v62 = vpop.f32.mrb[4].mxu1 }
 0x373   :  { %v6020_v63 = vpop.f32.mrb[5].mxu1 }
 0x376   :  { %v2292_v3 = vpop.f32.mrb[6].mxu1 }
 0x377   :  { %v6030_v4 = vpop.f32.mrb[7].mxu1 }
 0x37a   :  { %v2068_v6 = vpop.f32.mrb[4].mxu0  ;;  %v2438_v8 = vpop.f32.mrb[8].mxu1 }
 0x37b   :  { %v2145_v9 = vadd.f32 %v2144_v62, %v2068_v6  ;;  %v6015_v11 = vpop.f32.mrb[5].mxu0  ;;  %v6040_v14 = vpop.f32.mrb[9].mxu1  ;;  %v6904_v6 = vld [vmem:[%s7068_s2 + $0x38] sm:$0xff] }
 0x37e   :  { %v2218_v18 = vpop.f32.mrb[6].mxu0  ;;  %v2593_v20 = vpop.f32.mrb[10].mxu1 }
 0x37f   :  { %v2219_v21 = vadd.f32 %v2218_v18, %v2145_v9  ;;  %v6025_v5 = vpop.f32.mrb[7].mxu0  ;;  %v6050_v10 = vpop.f32.mrb[11].mxu1  ;;  %v5245_v9 = vand.u32 4294901760, %v6904_v6 }
 0x381   :  { %v2293_v22 = vadd.f32 %v2292_v3, %v2219_v21  ;;  %v6916_v14 = vsub.f32 %v6904_v6, %v5245_v9 }
 0x382   :  { %v2366_v24 = vpop.f32.mrb[8].mxu0  ;;  %v2741_v25 = vpop.f32.mrb[12].mxu1 }
 0x383   :  { %v2367_v26 = vadd.f32 %v2366_v24, %v2293_v22  ;;  %v6035_v27 = vpop.f32.mrb[9].mxu0  ;;  %v6060_v28 = vpop.f32.mrb[13].mxu1 }
 0x385   :  { %v2439_v30 = vadd.f32 %v2438_v8, %v2367_v26  ;;  %v5242_v8 = vand.u32 4294901760, %v6899_v13 }
 0x386   :  { %v2517_v7 = vpop.f32.mrb[10].mxu0  ;;  %v2887_v31 = vpop.f32.mrb[14].mxu1 }
 0x387   :  { %v3792_v32 = vadd.f32 %v2439_v30, %v1986_v29  ;;  %v2594_v33 = vadd.f32 %v2593_v20, %v2517_v7  ;;  %v6045_v15 = vpop.f32.mrb[11].mxu0  ;;  %v6070_v17 = vpop.f32.mrb[15].mxu1  ;;  %v6911_v11 = vsub.f32 %v6899_v13, %v5242_v8  ;;  %v5328_v20 = vand.u32 4294901760, %v6916_v14  ;;  %v3848_v13 = vld [vmem:[%s7068_s2 + $0x28] sm:$0xff] }
 0x389   :  { %3796 = vst.msk [vmem:[#allocation4] sm:$0xff] %vm30_vm0, %v3792_v32  ;;  %v5321_v18 = vand.u32 4294901760, %v6911_v11  ;;  %v5329_v22 = vsub.f32 %v6916_v14, %v5328_v20  ;;  %v6360_v17 = vpack.c.bf16 %v6916_v14, %v6911_v11 }
 0x38a   :  { %v2667_v16 = vpop.f32.mrb[12].mxu0 }
 0x38b   :  { %v2668_v19 = vadd.f32 %v2667_v16, %v2594_v33  ;;  %v6055_v38 = vpop.f32.mrb[13].mxu0  ;;  %v5322_v12 = vsub.f32 %v6911_v11, %v5321_v18 }
 0x38d   :  { %v2742_v39 = vadd.f32 %v2741_v25, %v2668_v19  ;;  %v5323_v24 = vand.u32 4294901760, %v5322_v12  ;;  %v5330_v25 = vand.u32 4294901760, %v5329_v22 }
 0x38e   :  { %v2815_v40 = vpop.f32.mrb[14].mxu0 }
 0x38f   :  { %v2816_v41 = vadd.f32 %v2815_v40, %v2742_v39  ;;  %v6065_v42 = vpop.f32.mrb[15].mxu0  ;;  %v6925_v28 = vpack.c.bf16 %v5330_v25, %v5323_v24  ;;  %v1965_v24 = vld [vmem:[#allocation4 + $0x18] sm:$0xff] }
 0x391   :  { %v2888_v43 = vadd.f32 %v2887_v31, %v2816_v41  ;;  %v3807_v31 = vld [vmem:[#allocation4] sm:$0xff] }
 0x399   :  { %v1949_v46 = vpop.xlane.xlu1 %1948 }
 0x39a   :  { %v1955_v52 = vadd.f32 %v1949_v46, %v1939_v45 }
 0x39c   :  { %1960 = vst.msk [vmem:[#allocation3 + $0x10] sm:$0xff] %vm21_vm4, %v1955_v52 }
 0x39d   :  { %v1952_v55 = vpop.xlane.xlu1 %1951 }
 0x39e   :  { %v1956_v56 = vadd.f32 %v1952_v55, %v1940_v53  ;;  %v1964_v53 = vld [vmem:[#allocation4 + $0x10] sm:$0xff] }
 0x3a0   :  { %1961 = vst.msk [vmem:[#allocation3 + $0x18] sm:$0xff] %vm21_vm4, %v1956_v56 }
 0x3a1   :  { %v1974_v58 = vpop.permute.xlu1 %1973 }
 0x3a2   :  { %v1987_v62 = vmul.f32 %v1974_v58, %v1963_v57 }
 0x3a3   :  { %v3813_v63 = vld [vmem:[#allocation3 + $0x10] sm:$0xff] }
 0x3a4   :  { %v3793_v3 = vadd.f32 %v2888_v43, %v1987_v62  ;;  %3827 = vperm.xlu1 %6462, %v3813_v63   ;;  %v6983_v63 = vpack.c.bf16 %v5245_v9, %v5242_v8 }
 0x3a6   :  { %3797 = vst.msk [vmem:[#allocation4 + $0x8] sm:$0xff] %vm30_vm0, %v3793_v3 }
 0x3a7   :  { %v3814_v34 = vld [vmem:[#allocation3 + $0x18] sm:$0xff] }
 0x3a8   :  { %3832 = vperm.xlu1 %6462, %v3814_v34  }
 0x3ad   :  { %v3808_v10 = vld [vmem:[#allocation4 + $0x8] sm:$0xff] }
 0x3b6   :  { %v3823_v4 = vpop.permute.xlu1 %3822 }
 0x3b7   :  { %6480 = vrcp.f32 %v3823_v4 }
 0x3bf   :  { %v3818_v21 = vpop.permute.xlu0 %3817 }
 0x3c0   :  { %6482 = vrcp.f32 %v3818_v21 }
 0x3c1   :  { %v6481_v5 = vpop.eup %6480 }
 0x3c2   :  { %v3838_v23 = vmul.f32 %v6481_v5, %v3808_v10  ;;  %v3847_v5 = vld [vmem:[%s7068_s2 + $0x20] sm:$0xff]  ;;  %v4783_v10 = vand.u32 4294901760, %v3848_v13  ;;  %s6522_s2 = smov [#allocation5]  }
 0x3c3   :  { %v1979_v55 = vpop.permute.xlu0 %1978  ;;  %v4780_v9 = vand.u32 4294901760, %v3847_v5  ;;  %s5715_s8 = sshll.u32 %s6522_s2, 4  ;;  %s5716_s8 = int_to_ptr.vmem [resolvable:$true] %s5715_s8 }
 0x3c4   :  { %v4315_v26 = vsel %vm30_vm0, %v3838_v23, 0  ;;  %v1988_v3 = vmul.f32 %v1979_v55, %v1964_v53  ;;  %s6488_s9 = scalar_lea.vmem %s5716_s8, 128  ;;  %p6493_p1 = scmp.lt.s32.totalorder %s5716_s8, %s5716_s8 }
 0x3c5   :  { %v6923_v27 = vand.u32 4294901760, %v4315_v26  ;;  %p6489_p0 = scmp.ne.s32.totalorder %s5716_s8, %s6488_s9  ;;  %p6494_p2 = scmp.lt.s32.totalorder %s6488_s9, %s6488_s9 }
 0x3c7   :  { %v4385_v29 = vsub.f32 %v4315_v26, %v6923_v27  ;;  %v1984_v25 = vpop.permute.xlu0 %1983  ;;  %p6495_p3 = por %p6494_p2, %p6493_p1 }
 0x3c9   :  { %v4386_v30 = vand.u32 4294901760, %v4385_v29  ;;  %p6496_p4 = pnand %p6495_p3, %p6489_p0 }
 0x3ca   :  { %v6483_v7 = vpop.eup %6482 }
 0x3cb   :  { %v4387_v32 = vsub.f32 %v4385_v29, %v4386_v30  ;;  %v3836_v33 = vmul.f32 %v6483_v7, %v3807_v31  ;;  %v1989_v7 = vmul.f32 %v1984_v25, %v1965_v24 }
 0x3cd   :  { %v4388_v15 = vand.u32 4294901760, %v4387_v32  ;;  %v3853_v16 = vsel %vm30_vm0, %v3836_v33, 0 }
 0x3ce   :  { %v6931_v19 = vand.u32 4294901760, %v3853_v16 }
 0x3cf   :  { %6178 = vmatmul.mubr.f32.vlgmr.msra.gmra.mrb[28].mxu1 %v4388_v15  ;;  %v4858_v15 = vsub.f32 %v3847_v5, %v4780_v9 }
 0x3d0   :  { %6322 = vmatpush3.bf16.msra.mxu1 %v6866_v48  ;;  %6184 = vmatprep.mubr.msk.f32.mxu1 %vm6514_vm1, %v6513_v2  ;;  %v3923_v38 = vsub.f32 %v3853_v16, %v6931_v19  ;;  %v6949_v48 = vpack.c.bf16 %v5328_v20, %v5321_v18  ;;  %v4865_v16 = vsub.f32 %v3848_v13, %v4783_v10 }
 0x3d1   :  { %6323 = vmatprep.subr.bf16.mxu1 %v6521_v37 }
 0x3d2   :  { %v3924_v39 = vand.u32 4294901760, %v3923_v38 }
 0x3d4   :  { %v3925_v40 = vsub.f32 %v3923_v38, %v3924_v39 }
 0x3d6   :  { %v3926_v41 = vand.u32 4294901760, %v3925_v40 }
 0x3d7   :  { %6185 = vmatmul.mubr.f32.vlgmr.msra.gmra.mrb[28].mxu1 %v6923_v27 }
 0x3d8   :  { %6325 = vmatpush3.bf16.msra.mxu1 %v6324_v54  ;;  %6191 = vmatprep.mubr.msk.f32.mxu1 %vm6514_vm1, %v6513_v2 }
 0x3d9   :  { %6136 = vmatmul.mubr.f32.vlgmr.msra.gmra.mrb[28].mxu0 %v3926_v41  ;;  %6326 = vmatprep.subr.bf16.mxu1 %v6521_v37 }
 0x3da   :  { %6304 = vmatpush3.bf16.msra.mxu0 %v6882_v59  ;;  %6142 = vmatprep.mubr.msk.f32.mxu0 %vm6514_vm1, %v6513_v2 }
 0x3db   :  { %6305 = vmatprep.subr.bf16.mxu0 %v6521_v37 }
 0x3df   :  { %6192 = vmatmul.mubr.f32.vlgmr.msra.gmra.mrb[28].mxu1 %v4385_v29 }
 0x3e0   :  { %6328 = vmatpush3.bf16.msra.mxu1 %v6846_v0  ;;  %6198 = vmatprep.mubr.msk.f32.mxu1 %vm6514_vm1, %v6513_v2 }
 0x3e1   :  { %6143 = vmatmul.mubr.f32.vlgmr.msra.gmra.mrb[28].mxu0 %v6931_v19  ;;  %6329 = vmatprep.subr.bf16.mxu1 %v6521_v37 }
 0x3e2   :  { %6307 = vmatpush3.bf16.msra.mxu0 %v6306_v61  ;;  %6149 = vmatprep.mubr.msk.f32.mxu0 %vm6514_vm1, %v6513_v2  ;;  %v3045_v35 = vpop.f32.mrb[16].mxu1 }
 0x3e3   :  { %6308 = vmatprep.subr.bf16.mxu0 %v6521_v37  ;;  %v6080_v36 = vpop.f32.mrb[17].mxu1 }
 0x3e6   :  { %v3193_v54 = vpop.f32.mrb[18].mxu1 }
 0x3e7   :  { %6199 = vmatmul.mubr.f32.vlgmr.msra.gmra.mrb[28].mxu1 %v4386_v30  ;;  %v6090_v59 = vpop.f32.mrb[19].mxu1 }
 0x3e8   :  { %6331 = vmatpush3.bf16.msra.mxu1 %v6886_v60  ;;  %6205 = vmatprep.mubr.msk.f32.mxu1 %vm6514_vm1, %v6513_v2 }
 0x3e9   :  { %6150 = vmatmul.mubr.f32.vlgmr.msra.gmra.mrb[28].mxu0 %v3923_v38  ;;  %6332 = vmatprep.subr.bf16.mxu1 %v6521_v37  ;;  %v2969_v50 = vpop.f32.mrb[16].mxu0  ;;  %v4859_v38 = vand.u32 4294901760, %v4858_v15 }
 0x3ea   :  { %6310 = vmatpush3.bf16.msra.mxu0 %v6868_v49  ;;  %6156 = vmatprep.mubr.msk.f32.mxu0 %vm6514_vm1, %v6513_v2  ;;  %v3046_v51 = vadd.f32 %v3045_v35, %v2969_v50  ;;  %v6075_v61 = vpop.f32.mrb[17].mxu0  ;;  %v3339_v42 = vpop.f32.mrb[20].mxu1 }
 0x3eb   :  { %6311 = vmatprep.subr.bf16.mxu0 %v6521_v37  ;;  %v6100_v43 = vpop.f32.mrb[21].mxu1  ;;  %v4860_v36 = vsub.f32 %v4858_v15, %v4859_v38 }
 0x3ed   :  { %v3119_v44 = vpop.f32.mrb[18].mxu0 }
 0x3ee   :  { %v3120_v60 = vadd.f32 %v3119_v44, %v3046_v51  ;;  %v6085_v45 = vpop.f32.mrb[19].mxu0  ;;  %v3494_v46 = vpop.f32.mrb[22].mxu1  ;;  %v4861_v44 = vand.u32 4294901760, %v4860_v36 }
 0x3ef   :  { %6206 = vmatmul.mubr.f32.vlgmr.msra.gmra.mrb[28].mxu1 %v6923_v27  ;;  %v6110_v47 = vpop.f32.mrb[23].mxu1 }
 0x3f0   :  { %6334 = vmatpush3.bf16.msra.mxu1 %v6846_v0  ;;  %6212 = vmatprep.mubr.msk.f32.mxu1 %vm6514_vm1, %v6513_v2  ;;  %v3194_v52 = vadd.f32 %v3193_v54, %v3120_v60 }
 0x3f1   :  { %6157 = vmatmul.mubr.f32.vlgmr.msra.gmra.mrb[28].mxu0 %v3924_v39  ;;  %6353 = vmatprep.subr.bf16.mxu1 %v6521_v37  ;;  %v3267_v56 = vpop.f32.mrb[20].mxu0  ;;  %v4866_v39 = vand.u32 4294901760, %v4865_v16 }
 0x3f2   :  { %6313 = vmatpush3.bf16.msra.mxu0 %v6888_v1  ;;  %6163 = vmatprep.mubr.msk.f32.mxu0 %vm6514_vm1, %v6513_v2  ;;  %v3268_v57 = vadd.f32 %v3267_v56, %v3194_v52  ;;  %v6095_v58 = vpop.f32.mrb[21].mxu0  ;;  %v3642_v62 = vpop.f32.mrb[24].mxu1 }
 0x3f3   :  { %6314 = vmatprep.subr.bf16.mxu0 %v6521_v37  ;;  %v6120_v0 = vpop.f32.mrb[25].mxu1  ;;  %v4867_v54 = vsub.f32 %v4865_v16, %v4866_v39  ;;  %v6348_v11 = vpack.c.bf16 %v4866_v39, %v4859_v38 }
 0x3f4   :  { %v3340_v34 = vadd.f32 %v3339_v42, %v3268_v57 }
 0x3f5   :  { %v3418_v4 = vpop.f32.mrb[22].mxu0  ;;  %v4868_v60 = vand.u32 4294901760, %v4867_v54 }
 0x3f6   :  { %v3794_v18 = vadd.f32 %v3340_v34, %v1988_v3  ;;  %v3495_v1 = vadd.f32 %v3494_v46, %v3418_v4  ;;  %v6105_v20 = vpop.f32.mrb[23].mxu0  ;;  %v3788_v21 = vpop.f32.mrb[26].mxu1 }
 0x3f7   :  { %6213 = vmatmul.mubr.f32.vlgmr.msra.gmra.mrb[28].mxu1 %v6923_v27  ;;  %v6130_v6 = vpop.f32.mrb[27].mxu1  ;;  %v7002_v27 = vpack.c.bf16 %v4783_v10, %v4780_v9  ;;  %v6339_v53 = vpack.c.bf16 %v4868_v60, %v4861_v44 }
 0x3f8   :  { %6355 = vmatpush3.bf16.msra.mxu1 %v6983_v63  ;;  %6261 = vmatprep.mubr.msk.f32.mxu1 %vm6514_vm1, %v6513_v2  ;;  %3798 = vst.msk [vmem:[#allocation4 + $0x10] sm:$0xff] %vm30_vm0, %v3794_v18 }
 0x3f9   :  { %6164 = vmatmul.mubr.f32.vlgmr.msra.gmra.mrb[28].mxu0 %v6931_v19  ;;  %6356 = vmatprep.subr.bf16.mxu1 %v6521_v37  ;;  %v3568_v8 = vpop.f32.mrb[24].mxu0 }
 0x3fa   :  { %6316 = vmatpush3.bf16.msra.mxu0 %v6868_v49  ;;  %6170 = vmatprep.mubr.msk.f32.mxu0 %vm6514_vm1, %v6513_v2  ;;  %v3569_v12 = vadd.f32 %v3568_v8, %v3495_v1  ;;  %v6115_v22 = vpop.f32.mrb[25].mxu0 }
 0x3fb   :  { %6335 = vmatprep.subr.bf16.mxu0 %v6521_v37 }
 0x3fc   :  { %v3643_v23 = vadd.f32 %v3642_v62, %v3569_v12  ;;  %v6342_v62 = vpack.c.bf16 %v4865_v16, %v4858_v15 }
 0x3fd   :  { %v3716_v26 = vpop.f32.mrb[26].mxu0 }
 0x3fe   :  { %v3717_v29 = vadd.f32 %v3716_v26, %v3643_v23  ;;  %v6125_v30 = vpop.f32.mrb[27].mxu0 }
 0x400   :  { %v3789_v31 = vadd.f32 %v3788_v21, %v3717_v29 }
 0x401   :  { %6171 = vmatmul.mubr.f32.vlgmr.msra.gmra.mrb[28].mxu0 %v6931_v19  ;;  %v3809_v19 = vld [vmem:[#allocation4 + $0x10] sm:$0xff] }
 0x402   :  { %6337 = vmatpush3.bf16.msra.mxu0 %v7002_v27  ;;  %6219 = vmatprep.mubr.msk.f32.mxu0 %vm6514_vm1, %v6513_v2  ;;  %v3795_v49 = vadd.f32 %v3789_v31, %v1989_v7 }
 0x403   :  { %6338 = vmatprep.subr.bf16.mxu0 %v6521_v37 }
 0x404   :  { %3799 = vst.msk [vmem:[#allocation4 + $0x18] sm:$0xff] %vm30_vm0, %v3795_v49 }
 0x40b   :  { %v3810_v50 = vld [vmem:[#allocation4 + $0x18] sm:$0xff] }
 0x423   :  { %v3828_v32 = vpop.permute.xlu1 %3827 }
 0x424   :  { %6484 = vrcp.f32 %v3828_v32 }
 0x427   :  { %v3833_v33 = vpop.permute.xlu1 %3832 }
 0x428   :  { %6486 = vrcp.f32 %v3833_v33 }
 0x42e   :  { %v6485_v40 = vpop.eup %6484 }
 0x42f   :  { %v3840_v41 = vmul.f32 %v6485_v40, %v3809_v19 }
 0x431   :  { %v4777_v35 = vsel %vm30_vm0, %v3840_v41, 0 }
 0x432   :  { %v6487_v59 = vpop.eup %6486  ;;  %v4846_v51 = vand.u32 4294901760, %v4777_v35 }
 0x433   :  { %v3842_v61 = vmul.f32 %v6487_v59, %v3810_v50 }
 0x434   :  { %v4847_v42 = vsub.f32 %v4777_v35, %v4846_v51 }
 0x435   :  { %v5239_v43 = vsel %vm30_vm0, %v3842_v61, 0 }
 0x436   :  { %v5308_v45 = vand.u32 4294901760, %v5239_v43  ;;  %v4848_v46 = vand.u32 4294901760, %v4847_v42 }
 0x438   :  { %v4849_v47 = vsub.f32 %v4847_v42, %v4848_v46  ;;  %v5309_v52 = vsub.f32 %v5239_v43, %v5308_v45 }
 0x43a   :  { %v4850_v55 = vand.u32 4294901760, %v4849_v47  ;;  %v5310_v56 = vand.u32 4294901760, %v5309_v52 }
 0x43c   :  { %6220 = vmatmul.mubr.f32.vlgmr.msra.gmra.mrb[30].mxu0 %v4850_v55  ;;  %v5311_v57 = vsub.f32 %v5309_v52, %v5310_v56 }
 0x43d   :  { %6340 = vmatpush3.bf16.msra.mxu0 %v6339_v53  ;;  %6226 = vmatprep.mubr.msk.f32.mxu0 %vm6514_vm1, %v6513_v2 }
 0x43e   :  { %v5312_v58 = vand.u32 4294901760, %v5311_v57  ;;  %6341 = vmatprep.subr.bf16.mxu0 %v6521_v37 }
 0x440   :  { %6262 = vmatmul.mubr.f32.vlgmr.msra.gmra.mrb[30].mxu1 %v5312_v58 }
 0x441   :  { %6358 = vmatpush3.bf16.msra.mxu1 %v6925_v28  ;;  %6268 = vmatprep.mubr.msk.f32.mxu1 %vm6514_vm1, %v6513_v2 }
 0x442   :  { %6359 = vmatprep.subr.bf16.mxu1 %v6521_v37 }
 0x444   :  { %6227 = vmatmul.mubr.f32.vlgmr.msra.gmra.mrb[30].mxu0 %v4846_v51 }
 0x445   :  { %6343 = vmatpush3.bf16.msra.mxu0 %v6342_v62  ;;  %6233 = vmatprep.mubr.msk.f32.mxu0 %vm6514_vm1, %v6513_v2 }
 0x446   :  { %6344 = vmatprep.subr.bf16.mxu0 %v6521_v37 }
 0x448   :  { %6269 = vmatmul.mubr.f32.vlgmr.msra.gmra.mrb[30].mxu1 %v5308_v45 }
 0x449   :  { %6361 = vmatpush3.bf16.msra.mxu1 %v6360_v17  ;;  %6275 = vmatprep.mubr.msk.f32.mxu1 %vm6514_vm1, %v6513_v2 }
 0x44a   :  { %6362 = vmatprep.subr.bf16.mxu1 %v6521_v37 }
 0x44c   :  { %6234 = vmatmul.mubr.f32.vlgmr.msra.gmra.mrb[30].mxu0 %v4847_v42 }
 0x44d   :  { %6346 = vmatpush3.bf16.msra.mxu0 %v7002_v27  ;;  %6240 = vmatprep.mubr.msk.f32.mxu0 %vm6514_vm1, %v6513_v2 }
 0x44e   :  { %6347 = vmatprep.subr.bf16.mxu0 %v6521_v37 }
 0x450   :  { %6276 = vmatmul.mubr.f32.vlgmr.msra.gmra.mrb[30].mxu1 %v5309_v52 }
 0x451   :  { %6364 = vmatpush3.bf16.msra.mxu1 %v6983_v63  ;;  %6282 = vmatprep.mubr.msk.f32.mxu1 %vm6514_vm1, %v6513_v2 }
 0x452   :  { %6365 = vmatprep.subr.bf16.mxu1 %v6521_v37 }
 0x454   :  { %6241 = vmatmul.mubr.f32.vlgmr.msra.gmra.mrb[30].mxu0 %v4848_v46 }
 0x455   :  { %6349 = vmatpush3.bf16.msra.mxu0 %v6348_v11  ;;  %6247 = vmatprep.mubr.msk.f32.mxu0 %vm6514_vm1, %v6513_v2 }
 0x456   :  { %6350 = vmatprep.subr.bf16.mxu0 %v6521_v37 }
 0x458   :  { %6283 = vmatmul.mubr.f32.vlgmr.msra.gmra.mrb[30].mxu1 %v5310_v56 }
 0x459   :  { %6367 = vmatpush3.bf16.msra.mxu1 %v6949_v48  ;;  %6289 = vmatprep.mubr.msk.f32.mxu1 %vm6514_vm1, %v6513_v2 }
 0x45a   :  { %6368 = vmatprep.subr.bf16.mxu1 %v6521_v37 }
 0x45c   :  { %6248 = vmatmul.mubr.f32.vlgmr.msra.gmra.mrb[30].mxu0 %v4846_v51 }
 0x45d   :  { %6352 = vmatpush3.bf16.msra.mxu0 %v7002_v27  ;;  %6254 = vmatprep.mubr.msk.f32.mxu0 %vm6514_vm1, %v6513_v2 }
 0x460   :  { %6290 = vmatmul.mubr.f32.vlgmr.msra.gmra.mrb[30].mxu1 %v5308_v45 }
 0x461   :  { %6370 = vmatpush3.bf16.msra.mxu1 %v6983_v63  ;;  %6296 = vmatprep.mubr.msk.f32.mxu1 %vm6514_vm1, %v6513_v2 }
 0x464   :  { %6255 = vmatmul.mubr.f32.vlgmr.msra.gmra.mrb[30].mxu0 %v4846_v51 }
 0x468   :  { %6297 = vmatmul.mubr.f32.vlgmr.msra.gmra.mrb[30].mxu1 %v5308_v45 }
 0x4ca   :  { %v4772_v14 = vpop.f32.mrb[28].mxu1 }
 0x4cb   :  { %v6214_v28 = vpop.f32.mrb[29].mxu1  ;;  %v5702_v37 = vsel %vm5700_vm5, %v4772_v14, 0.0 }
 0x4d4   :  { %v4310_v17 = vpop.f32.mrb[28].mxu0 }
 0x4d5   :  { %v5701_v48 = vsel %vm5700_vm5, %v4310_v17, 0.0  ;;  %v6172_v0 = vpop.f32.mrb[29].mxu0 }
 0x4d6   :  { %v5703_v3 = vadd.f32 %v5702_v37, %v5701_v48 }
 0x537   :  { %v5234_v34 = vpop.f32.mrb[30].mxu0 }
 0x538   :  { %v5704_v4 = vsel %vm5700_vm5, %v5234_v34, 0.0  ;;  %v6256_v18 = vpop.f32.mrb[31].mxu0 }
 0x539   :  { %v5705_v63 = vadd.f32 %v5704_v4, %v5703_v3 }
 0x53b   :  { %v5696_v2 = vpop.f32.mrb[30].mxu1 }
 0x53c   :  { %v5706_v1 = vsel %vm5700_vm5, %v5696_v2, 0.0  ;;  %v6298_v20 = vpop.f32.mrb[31].mxu1 }
 0x53d   :  { %v5707_v21 = vadd.f32 %v5706_v1, %v5705_v63 }
 0x53f   :  { %5708 = vst.msk [vmem:[#allocation5] sm:$0xff] %vm5700_vm5, %v5707_v21 }
 0x540   :  { %6499 = shalt.err (!%p6496_p4)
}
 0x541   :  { %s6500_s12 = scalar_lea.hbm %s7069_s3, 128 }
 0x542   :  { %p6501_p5 = scmp.ne.s32.totalorder %s7069_s3, %s6500_s12  ;;  %p6504_p6 = scmp.lt.u32.totalorder %s6500_s12, %s7069_s3 }
 0x544   :  { %p6506_p7 = pnand %p6504_p6, %p6501_p5 }
 0x546   :  { %6509 = shalt.err (!%p6506_p7)
}
 0x547   :  { %5718 = dma.vmem_to_hbm [thread:$0]  %s5716_s8, 128, %s7069_s3, [#allocation6]  }
 0x548   :  { %6510 = dma.done.wait [#allocation6], 128  }
 0x549   :  { %6511 = vsyncadd [#allocation6], 4294967168 }
 0x54a   :  { %5722 = vsyncpa [#allocation6], 1 }

</bundles_post_ra>
